<compile_context>
chip_gen: v6e
topology: v6e:2x2x1
jax: 0.10.0
libtpu: 0.0.40
codegen_flags: <defaults>
</compile_context>

<pallas_src>
import functools

import jax
import jax.numpy as jnp
from jax import lax
from jax.experimental import pallas as pl
from jax.experimental.pallas import tpu as pltpu


_LANE = 128
_ROW_ALIGN = 16                # min batch-tile rows (packed bf16 sublanes)
_DEF_BATCH_TILE = 256
_MIN_SPLIT_ROWS = 64           # only split the batch into >=2 tiles above 2x this
_FULL_UNROLL_LAYERS = 8        # fully unroll the layer chain up to this depth


def _leaky_relu(y):
    # LeakyReLU(0.1): single vmax instead of vcmp+vsel
    return jnp.maximum(y, 0.1 * y)


def _round_up(n, m):
    return ((n + m - 1) // m) * m


def _vmem_capacity_bytes():
    try:
        return int(pltpu.get_tpu_info().vmem_capacity_bytes)
    except Exception:
        return 64 << 20        # conservative fallback (v7x per-TC VMEM)


def _compiler_params(semantics, est_bytes, vmem_cap):
    # Raise the scoped VMEM limit to comfortably cover the estimate, but never
    # request more than the physical capacity (minus headroom for compiler scratch).
    limit = max(int(est_bytes) + (8 << 20), 32 << 20)
    limit = min(limit, vmem_cap - (4 << 20))
    return pltpu.CompilerParams(dimension_semantics=semantics,
                                vmem_limit_bytes=int(limit))


def _pick_layer_block(num_layers, max_lb=4):
    """Largest layer-block size <= max_lb wasting at most one zero-padded layer."""
    best = 1
    for lb in range(2, min(num_layers, max_lb) + 1):
        if (-num_layers) % lb <= 1:
            best = lb
    return best


# -----------------------------------------------------------------------------
# Kernels
# -----------------------------------------------------------------------------
def _first_layer_kernel(cx_ref, t_ref, wcx_ref, wt_ref, b1_ref, o_ref):
    """concat([c, t, x]) @ W1 + b1 == [c|x] @ [W_c; W_x] + t*w_t + b1 (one MXU matmul)."""
    y = jnp.dot(cx_ref[...], wcx_ref[...], preferred_element_type=jnp.float32)
    y = y + t_ref[...] * wt_ref[...] + b1_ref[...]
    o_ref[...] = _leaky_relu(y).astype(o_ref.dtype)


def _fused_kernel(cx_ref, t_ref, wcx_ref, wt_ref, b1_ref, ws_ref, bs_ref, o_ref,
                  *, num_layers):
    """First Linear+LeakyReLU plus the whole ResMLP chain in one invocation
    (whole weight stack resident in VMEM)."""
    y = jnp.dot(cx_ref[...], wcx_ref[...], preferred_element_type=jnp.float32)
    y = y + t_ref[...] * wt_ref[...] + b1_ref[...]
    h = _leaky_relu(y)

    def layer(l, h):
        w = ws_ref[l]                                                     # (Dp, Dp) bf16
        b = bs_ref[l]                                                     # (1, Dp)  f32
        y = jnp.dot(h.astype(w.dtype), w, preferred_element_type=jnp.float32) + b
        return _leaky_relu(y)

    if num_layers <= _FULL_UNROLL_LAYERS:
        for l in range(num_layers):            # static full unroll: LLO sees the chain
            h = layer(l, h)
    else:
        # Bound code size / vreg pressure for deep stacks, keep some unroll for LLO.
        h = lax.fori_loop(0, num_layers, layer, h, unroll=4)

    o_ref[...] = h.astype(o_ref.dtype)


def _stream_kernel(h0_ref, w_ref, b_ref, o_ref, *, layers_per_block, pad_layers):
    """Layer-streaming variant: grid=(batch_tiles, layer_blocks).

    `layers_per_block` weight panels are DMA'd per grid step (double-buffered by the
    pipeline); the hidden state is carried in the resident f32 output block across
    the sequential ("arbitrary", last) layer axis. h0 comes from a separate
    first-layer pallas_call, so no dead c/x/W_cx residency here."""
    lb = pl.program_id(1)
    n_lb = pl.num_programs(1)

    @pl.when(lb == 0)
    def _init():
        o_ref[...] = h0_ref[...].astype(o_ref.dtype)

    h = o_ref[...]                                                        # carried f32
    for j in range(layers_per_block):
        w = w_ref[j]
        b = b_ref[j]
        y = jnp.dot(h.astype(w.dtype), w, preferred_element_type=jnp.float32) + b
        hn = _leaky_relu(y)
        if pad_layers and j >= layers_per_block - pad_layers:
            # Zero-padded tail layers only exist in the very last layer block.
            h = jnp.where(lb < n_lb - 1, hn, h)
        else:
            h = hn
    o_ref[...] = h.astype(o_ref.dtype)


# -----------------------------------------------------------------------------
# Parameters
# -----------------------------------------------------------------------------
def init_params(key, n_feats, n_denoise_res, mm_dtype=jnp.bfloat16):
    """PyTorch-Linear-style uniform init, W1 split by the concat order [c, t, x],
    the c/x parts re-stacked into one (2*Dp, Dp) operand, and every feature dim
    zero-padded up to a multiple of 128 (padded lanes stay exactly 0)."""
    D = 4 * n_feats
    Dp = _round_up(D, _LANE)
    Din = 2 * D + 1
    k1, k2, k3, k4 = jax.random.split(key, 4)
    s1 = 1.0 / (Din ** 0.5)
    s2 = 1.0 / (D ** 0.5)
    w1 = jax.random.uniform(k1, (Din, D), jnp.float32, -s1, s1)
    b1 = jax.random.uniform(k2, (1, D), jnp.float32, -s1, s1)
    ws = jax.random.uniform(k3, (n_denoise_res, D, D), jnp.float32, -s2, s2)
    bs = jax.random.uniform(k4, (n_denoise_res, 1, D), jnp.float32, -s2, s2)

    w_c = w1[:D]                  # (D, D)
    w_t = w1[D:D + 1]             # (1, D)
    w_x = w1[D + 1:]              # (D, D)
    padf = Dp - D

    def padw(w):
        return jnp.pad(w, ((0, padf), (0, padf)))

    wcx = jnp.concatenate([padw(w_c), padw(w_x)], axis=0).astype(mm_dtype)  # (2*Dp, Dp)
    wt_p = jnp.pad(w_t, ((0, 0), (0, padf)))                                # (1, Dp)  f32
    b1_p = jnp.pad(b1, ((0, 0), (0, padf)))                                 # (1, Dp)  f32
    ws_p = jnp.pad(ws, ((0, 0), (0, padf), (0, padf))).astype(mm_dtype)     # (L, Dp, Dp)
    bs_p = jnp.pad(bs, ((0, 0), (0, 0), (0, padf)))                         # (L, 1, Dp) f32
    return wcx, wt_p, b1_p, ws_p, bs_p


# -----------------------------------------------------------------------------
# Forward
# -----------------------------------------------------------------------------
def _denoise_forward(x, t, c, params, max_period, *, batch_tile, force_stream,
                     single_buffer_weights):
    wcx, wt, b1, ws, bs = params
    B, D = x.shape
    Dp = wcx.shape[1]
    L = ws.shape[0]
    mm_dtype = wcx.dtype
    itm = jnp.dtype(mm_dtype).itemsize
    vmem_cap = _vmem_capacity_bytes()

    w_spec = dict(pipeline_mode=pl.Buffered(1)) if single_buffer_weights else {}
    n_wbuf = 1 if single_buffer_weights else 2

    # ---- glue: t/max_period in f32, pad features to Dp, pre-concat [c|x] ----
    tf = t.astype(jnp.float32).reshape(-1, 1) / float(max_period)          # (B, 1)
    cx = jnp.concatenate(
        [jnp.pad(c.astype(mm_dtype), ((0, 0), (0, Dp - D))),
         jnp.pad(x.astype(mm_dtype), ((0, 0), (0, Dp - D)))], axis=1)      # (B, 2*Dp) bf16

    # ---- batch-tile selection ----
    def pick_tb(cap_tile):
        if B <= _ROW_ALIGN:
            return _ROW_ALIGN                      # unmasked packed loads/stores
        if B <= 2 * _MIN_SPLIT_ROWS:
            return _round_up(B, _ROW_ALIGN)
        # enough work: keep >= 2 tiles so the "parallel" axis spans both v7x TCs
        return max(_ROW_ALIGN, min(cap_tile, _round_up((B + 1) // 2, _ROW_ALIGN)))

    # fused-path VMEM estimate with the fused-path tile size
    TB_f = pick_tb(batch_tile)
    weight_bytes = n_wbuf * ((wcx.size + ws.size) * itm
                             + (wt.size + b1.size + bs.size) * 4)
    act_bytes = 2 * (TB_f * 2 * Dp * itm + TB_f * _LANE * 4) + 2 * TB_f * Dp * 4
    fused_est = weight_bytes + act_bytes
    budget = vmem_cap - (12 << 20)
    use_stream = (force_stream or fused_est > budget) and L >= 1

    # streaming path re-streams the whole weight stack per batch tile -> maximize TB
    TB = pick_tb(max(batch_tile, 512)) if use_stream else TB_f
    Bp = _round_up(B, TB)
    nb = Bp // TB
    if Bp != B:
        cx = jnp.pad(cx, ((0, Bp - B), (0, 0)))
        tf = jnp.pad(tf, ((0, Bp - B), (0, 0)))

    def first_layer_call():
        est = (n_wbuf * (wcx.size * itm + (wt.size + b1.size) * 4)
               + 2 * (TB * 2 * Dp * itm + TB * _LANE * 4) + 2 * TB * Dp * 4)
        return pl.pallas_call(
            _first_layer_kernel,
            out_shape=jax.ShapeDtypeStruct((Bp, Dp), jnp.float32),
            grid=(nb,),
            in_specs=[
                pl.BlockSpec((TB, 2 * Dp), lambda i: (i, 0)),                 # [c|x]
                pl.BlockSpec((TB, 1), lambda i: (i, 0)),                      # t/max_period
                pl.BlockSpec((2 * Dp, Dp), lambda i: (0, 0), **w_spec),       # [W_c; W_x]
                pl.BlockSpec((1, Dp), lambda i: (0, 0), **w_spec),            # w_t
                pl.BlockSpec((1, Dp), lambda i: (0, 0), **w_spec),            # b1
            ],
            out_specs=pl.BlockSpec((TB, Dp), lambda i: (i, 0)),
            compiler_params=_compiler_params(("parallel",), est, vmem_cap),
        )(cx, tf, wcx, wt, b1)

    def fused_call():
        kernel = functools.partial(_fused_kernel, num_layers=L)
        return pl.pallas_call(
            kernel,
            out_shape=jax.ShapeDtypeStruct((Bp, Dp), jnp.float32),
            grid=(nb,),
            in_specs=[
                pl.BlockSpec((TB, 2 * Dp), lambda i: (i, 0)),                 # [c|x]
                pl.BlockSpec((TB, 1), lambda i: (i, 0)),                      # t/max_period
                pl.BlockSpec((2 * Dp, Dp), lambda i: (0, 0), **w_spec),       # [W_c; W_x]
                pl.BlockSpec((1, Dp), lambda i: (0, 0), **w_spec),            # w_t
                pl.BlockSpec((1, Dp), lambda i: (0, 0), **w_spec),            # b1
                pl.BlockSpec((L, Dp, Dp), lambda i: (0, 0, 0), **w_spec),     # full W stack
                pl.BlockSpec((L, 1, Dp), lambda i: (0, 0, 0), **w_spec),      # full b stack
            ],
            out_specs=pl.BlockSpec((TB, Dp), lambda i: (i, 0)),
            compiler_params=_compiler_params(("parallel",), fused_est, vmem_cap),
        )(cx, tf, wcx, wt, b1, ws, bs)

    def stream_call(h0):
        lb_sz = _pick_layer_block(L)
        n_lb = -(-L // lb_sz)
        pad_l = n_lb * lb_sz - L
        ws_s = jnp.pad(ws, ((0, pad_l), (0, 0), (0, 0))) if pad_l else ws
        bs_s = jnp.pad(bs, ((0, pad_l), (0, 0), (0, 0))) if pad_l else bs
        kernel = functools.partial(_stream_kernel,
                                   layers_per_block=lb_sz, pad_layers=pad_l)
        est = (2 * lb_sz * Dp * Dp * itm + 2 * lb_sz * 8 * Dp * 4   # streamed W / b panels
               + 2 * TB * Dp * 4                                    # h0 blocks
               + 2 * TB * Dp * 4)                                   # carried output blocks
        return pl.pallas_call(
            kernel,
            out_shape=jax.ShapeDtypeStruct((Bp, Dp), jnp.float32),
            grid=(nb, n_lb),
            in_specs=[
                pl.BlockSpec((TB, Dp), lambda i, lb: (i, 0)),                 # h0
                pl.BlockSpec((lb_sz, Dp, Dp), lambda i, lb: (lb, 0, 0)),      # W[lb] panel
                pl.BlockSpec((lb_sz, 1, Dp), lambda i, lb: (lb, 0, 0)),       # b[lb] panel
            ],
            out_specs=pl.BlockSpec((TB, Dp), lambda i, lb: (i, 0)),           # carried h
            compiler_params=_compiler_params(("parallel", "arbitrary"), est, vmem_cap),
        )(h0, ws_s, bs_s)

    if L == 0:
        out = first_layer_call()
    elif not use_stream:
        out = fused_call()
    else:
        out = stream_call(first_layer_call())

    return out[:B, :D]


def denoise_forward(x, t, c, params, max_period, *,
                    batch_tile=_DEF_BATCH_TILE, force_stream=False,
                    single_buffer_weights=True):
    try:
        return _denoise_forward(x, t, c, params, max_period,
                                batch_tile=batch_tile, force_stream=force_stream,
                                single_buffer_weights=single_buffer_weights)
    except Exception:
        if not single_buffer_weights:
            raise
        # Fall back to default double-buffered resident weights if this jax/libtpu
        # version rejects pipeline_mode=pl.Buffered(1).
        return _denoise_forward(x, t, c, params, max_period,
                                batch_tile=batch_tile, force_stream=force_stream,
                                single_buffer_weights=False)


# -----------------------------------------------------------------------------
# Pure-JAX reference (same bf16-matmul / f32-epilogue precision policy)
# -----------------------------------------------------------------------------
def denoise_ref(x, t, c, params, max_period):
    wcx, wt, b1, ws, bs = params
    B, D = x.shape
    Dp = wcx.shape[1]
    mm = wcx.dtype
    tf = t.astype(jnp.float32).reshape(-1, 1) / float(max_period)
    cp = jnp.pad(c, ((0, 0), (0, Dp - D))).astype(mm)
    xp = jnp.pad(x, ((0, 0), (0, Dp - D))).astype(mm)
    cx = jnp.concatenate([cp, xp], axis=1)
    y = jnp.dot(cx, wcx, preferred_element_type=jnp.float32) + tf * wt + b1
    h = _leaky_relu(y)
    for l in range(ws.shape[0]):
        y = jnp.dot(h.astype(mm), ws[l], preferred_element_type=jnp.float32) + bs[l]
        h = _leaky_relu(y)
    return h[:, :D]


if __name__ == "__main__":
    # Small shapes consistent with the module: n_feats=8 -> D = 4*n_feats = 32
    # (padded to 128 lanes inside the wrapper), n_denoise_res=5, timesteps=5.
    n_feats = 8
    n_denoise_res = 5
    timesteps = 5
    max_period = timesteps * 10
    D = 4 * n_feats
    B = 4

    key = jax.random.PRNGKey(0)
    kx, kc, kt, kp = jax.random.split(key, 4)
    x = jax.random.normal(kx, (B, D), jnp.float32)
    c = jax.random.normal(kc, (B, D), jnp.float32)
    t = jax.random.randint(kt, (B,), 0, timesteps)     # integer timestep, cast in forward

    params = init_params(kp, n_feats, n_denoise_res)
    ref = denoise_ref(x, t, c, params, max_period)

    # Fused single-call path (default for weight stacks that fit VMEM).
    out = jax.block_until_ready(denoise_forward(x, t, c, params, max_period))
    assert out.shape == (B, D)
    assert jnp.allclose(out, ref, atol=1e-2, rtol=1e-2), "fused kernel mismatch vs reference"

    # Also exercise the layer-streaming path (used when the stack exceeds the VMEM budget).
    out_s = jax.block_until_ready(
        denoise_forward(x, t, c, params, max_period, force_stream=True))
    assert jnp.allclose(out_s, ref, atol=1e-2, rtol=1e-2), "streaming kernel mismatch vs reference"

    print("KERNEL_OK")
</pallas_src>

<mosaic_0001>
module attributes {stable_mosaic.version = 11 : i64} {
  func.func @_fused_kernel(%arg0: i32, %arg1: memref<16x256xbf16, #tpu.memory_space<vmem>>, %arg2: memref<16x1xf32, #tpu.memory_space<vmem>>, %arg3: memref<256x128xbf16, #tpu.memory_space<vmem>>, %arg4: memref<1x128xf32, #tpu.memory_space<vmem>>, %arg5: memref<1x128xf32, #tpu.memory_space<vmem>>, %arg6: memref<5x128x128xbf16, #tpu.memory_space<vmem>>, %arg7: memref<5x1x128xf32, #tpu.memory_space<vmem>>, %arg8: memref<16x128xf32, #tpu.memory_space<vmem>>) attributes {dimension_semantics = [#tpu.dimension_semantics<parallel>], iteration_bounds = array<i64: 1>, scalar_prefetch = 0 : i64, scratch_operands = 0 : i64, tpu.core_type = #tpu.core_type<tc>, window_params = [{transform_indices = @transform_0, window_bounds = array<i64: 16, 256>}, {transform_indices = @transform_1, window_bounds = array<i64: 16, 1>}, {pipeline_mode = #tpu.pipeline_mode<synchronous>, transform_indices = @transform_2, window_bounds = array<i64: 256, 128>}, {pipeline_mode = #tpu.pipeline_mode<synchronous>, transform_indices = @transform_3, window_bounds = array<i64: 1, 128>}, {pipeline_mode = #tpu.pipeline_mode<synchronous>, transform_indices = @transform_4, window_bounds = array<i64: 1, 128>}, {pipeline_mode = #tpu.pipeline_mode<synchronous>, transform_indices = @transform_5, window_bounds = array<i64: 5, 128, 128>}, {pipeline_mode = #tpu.pipeline_mode<synchronous>, transform_indices = @transform_6, window_bounds = array<i64: 5, 1, 128>}, {transform_indices = @transform_7, window_bounds = array<i64: 16, 128>}]} {
    %c0 = arith.constant 0 : index
    %c0_0 = arith.constant 0 : index
    %0 = vector.load %arg1[%c0, %c0_0] : memref<16x256xbf16, #tpu.memory_space<vmem>>, vector<16x256xbf16>
    %c0_1 = arith.constant 0 : index
    %c0_2 = arith.constant 0 : index
    %1 = vector.load %arg3[%c0_1, %c0_2] : memref<256x128xbf16, #tpu.memory_space<vmem>>, vector<256x128xbf16>
    %cst = arith.constant dense<0.000000e+00> : vector<16x128xf32>
    %2 = tpu.matmul %0, %1, %cst {dimension_numbers = #tpu.dot_dimension_numbers<[1], [0], [0], [1], [0, 0, 1, 1], [], []>} : vector<16x256xbf16>, vector<256x128xbf16>, vector<16x128xf32> -> vector<16x128xf32>
    %c0_3 = arith.constant 0 : index
    %c0_4 = arith.constant 0 : index
    %3 = vector.load %arg2[%c0_3, %c0_4] : memref<16x1xf32, #tpu.memory_space<vmem>>, vector<16x1xf32>
    %c0_5 = arith.constant 0 : index
    %c0_6 = arith.constant 0 : index
    %4 = vector.load %arg4[%c0_5, %c0_6] : memref<1x128xf32, #tpu.memory_space<vmem>>, vector<1x128xf32>
    %5 = vector.broadcast %3 : vector<16x1xf32> to vector<16x128xf32>
    %6 = vector.broadcast %4 : vector<1x128xf32> to vector<16x128xf32>
    %7 = arith.mulf %5, %6 : vector<16x128xf32>
    %8 = arith.addf %2, %7 : vector<16x128xf32>
    %c0_7 = arith.constant 0 : index
    %c0_8 = arith.constant 0 : index
    %9 = vector.load %arg5[%c0_7, %c0_8] : memref<1x128xf32, #tpu.memory_space<vmem>>, vector<1x128xf32>
    %10 = vector.broadcast %9 : vector<1x128xf32> to vector<16x128xf32>
    %11 = arith.addf %8, %10 : vector<16x128xf32>
    %cst_9 = arith.constant 1.000000e-01 : f32
    %12 = vector.broadcast %cst_9 : f32 to vector<16x128xf32>
    %13 = arith.mulf %12, %11 : vector<16x128xf32>
    %14 = arith.maximumf %11, %13 : vector<16x128xf32>
    %c0_10 = arith.constant 0 : index
    %c0_11 = arith.constant 0 : index
    %c0_12 = arith.constant 0 : index
    %15 = vector.load %arg6[%c0_10, %c0_11, %c0_12] : memref<5x128x128xbf16, #tpu.memory_space<vmem>>, vector<1x128x128xbf16>
    %16 = vector.shape_cast %15 : vector<1x128x128xbf16> to vector<128x128xbf16>
    %c0_13 = arith.constant 0 : index
    %c0_14 = arith.constant 0 : index
    %c0_15 = arith.constant 0 : index
    %17 = vector.load %arg7[%c0_13, %c0_14, %c0_15] : memref<5x1x128xf32, #tpu.memory_space<vmem>>, vector<1x1x128xf32>
    %18 = vector.shape_cast %17 : vector<1x1x128xf32> to vector<1x128xf32>
    %19 = arith.truncf %14 : vector<16x128xf32> to vector<16x128xbf16>
    %cst_16 = arith.constant dense<0.000000e+00> : vector<16x128xf32>
    %20 = tpu.matmul %19, %16, %cst_16 {dimension_numbers = #tpu.dot_dimension_numbers<[1], [0], [0], [1], [0, 0, 1, 1], [], []>} : vector<16x128xbf16>, vector<128x128xbf16>, vector<16x128xf32> -> vector<16x128xf32>
    %21 = vector.broadcast %18 : vector<1x128xf32> to vector<16x128xf32>
    %22 = arith.addf %20, %21 : vector<16x128xf32>
    %cst_17 = arith.constant 1.000000e-01 : f32
    %23 = vector.broadcast %cst_17 : f32 to vector<16x128xf32>
    %24 = arith.mulf %23, %22 : vector<16x128xf32>
    %25 = arith.maximumf %22, %24 : vector<16x128xf32>
    %c1 = arith.constant 1 : index
    %c0_18 = arith.constant 0 : index
    %c0_19 = arith.constant 0 : index
    %26 = vector.load %arg6[%c1, %c0_18, %c0_19] : memref<5x128x128xbf16, #tpu.memory_space<vmem>>, vector<1x128x128xbf16>
    %27 = vector.shape_cast %26 : vector<1x128x128xbf16> to vector<128x128xbf16>
    %c1_20 = arith.constant 1 : index
    %c0_21 = arith.constant 0 : index
    %c0_22 = arith.constant 0 : index
    %28 = vector.load %arg7[%c1_20, %c0_21, %c0_22] : memref<5x1x128xf32, #tpu.memory_space<vmem>>, vector<1x1x128xf32>
    %29 = vector.shape_cast %28 : vector<1x1x128xf32> to vector<1x128xf32>
    %30 = arith.truncf %25 : vector<16x128xf32> to vector<16x128xbf16>
    %cst_23 = arith.constant dense<0.000000e+00> : vector<16x128xf32>
    %31 = tpu.matmul %30, %27, %cst_23 {dimension_numbers = #tpu.dot_dimension_numbers<[1], [0], [0], [1], [0, 0, 1, 1], [], []>} : vector<16x128xbf16>, vector<128x128xbf16>, vector<16x128xf32> -> vector<16x128xf32>
    %32 = vector.broadcast %29 : vector<1x128xf32> to vector<16x128xf32>
    %33 = arith.addf %31, %32 : vector<16x128xf32>
    %cst_24 = arith.constant 1.000000e-01 : f32
    %34 = vector.broadcast %cst_24 : f32 to vector<16x128xf32>
    %35 = arith.mulf %34, %33 : vector<16x128xf32>
    %36 = arith.maximumf %33, %35 : vector<16x128xf32>
    %c2 = arith.constant 2 : index
    %c0_25 = arith.constant 0 : index
    %c0_26 = arith.constant 0 : index
    %37 = vector.load %arg6[%c2, %c0_25, %c0_26] : memref<5x128x128xbf16, #tpu.memory_space<vmem>>, vector<1x128x128xbf16>
    %38 = vector.shape_cast %37 : vector<1x128x128xbf16> to vector<128x128xbf16>
    %c2_27 = arith.constant 2 : index
    %c0_28 = arith.constant 0 : index
    %c0_29 = arith.constant 0 : index
    %39 = vector.load %arg7[%c2_27, %c0_28, %c0_29] : memref<5x1x128xf32, #tpu.memory_space<vmem>>, vector<1x1x128xf32>
    %40 = vector.shape_cast %39 : vector<1x1x128xf32> to vector<1x128xf32>
    %41 = arith.truncf %36 : vector<16x128xf32> to vector<16x128xbf16>
    %cst_30 = arith.constant dense<0.000000e+00> : vector<16x128xf32>
    %42 = tpu.matmul %41, %38, %cst_30 {dimension_numbers = #tpu.dot_dimension_numbers<[1], [0], [0], [1], [0, 0, 1, 1], [], []>} : vector<16x128xbf16>, vector<128x128xbf16>, vector<16x128xf32> -> vector<16x128xf32>
    %43 = vector.broadcast %40 : vector<1x128xf32> to vector<16x128xf32>
    %44 = arith.addf %42, %43 : vector<16x128xf32>
    %cst_31 = arith.constant 1.000000e-01 : f32
    %45 = vector.broadcast %cst_31 : f32 to vector<16x128xf32>
    %46 = arith.mulf %45, %44 : vector<16x128xf32>
    %47 = arith.maximumf %44, %46 : vector<16x128xf32>
    %c3 = arith.constant 3 : index
    %c0_32 = arith.constant 0 : index
    %c0_33 = arith.constant 0 : index
    %48 = vector.load %arg6[%c3, %c0_32, %c0_33] : memref<5x128x128xbf16, #tpu.memory_space<vmem>>, vector<1x128x128xbf16>
    %49 = vector.shape_cast %48 : vector<1x128x128xbf16> to vector<128x128xbf16>
    %c3_34 = arith.constant 3 : index
    %c0_35 = arith.constant 0 : index
    %c0_36 = arith.constant 0 : index
    %50 = vector.load %arg7[%c3_34, %c0_35, %c0_36] : memref<5x1x128xf32, #tpu.memory_space<vmem>>, vector<1x1x128xf32>
    %51 = vector.shape_cast %50 : vector<1x1x128xf32> to vector<1x128xf32>
    %52 = arith.truncf %47 : vector<16x128xf32> to vector<16x128xbf16>
    %cst_37 = arith.constant dense<0.000000e+00> : vector<16x128xf32>
    %53 = tpu.matmul %52, %49, %cst_37 {dimension_numbers = #tpu.dot_dimension_numbers<[1], [0], [0], [1], [0, 0, 1, 1], [], []>} : vector<16x128xbf16>, vector<128x128xbf16>, vector<16x128xf32> -> vector<16x128xf32>
    %54 = vector.broadcast %51 : vector<1x128xf32> to vector<16x128xf32>
    %55 = arith.addf %53, %54 : vector<16x128xf32>
    %cst_38 = arith.constant 1.000000e-01 : f32
    %56 = vector.broadcast %cst_38 : f32 to vector<16x128xf32>
    %57 = arith.mulf %56, %55 : vector<16x128xf32>
    %58 = arith.maximumf %55, %57 : vector<16x128xf32>
    %c4 = arith.constant 4 : index
    %c0_39 = arith.constant 0 : index
    %c0_40 = arith.constant 0 : index
    %59 = vector.load %arg6[%c4, %c0_39, %c0_40] : memref<5x128x128xbf16, #tpu.memory_space<vmem>>, vector<1x128x128xbf16>
    %60 = vector.shape_cast %59 : vector<1x128x128xbf16> to vector<128x128xbf16>
    %c4_41 = arith.constant 4 : index
    %c0_42 = arith.constant 0 : index
    %c0_43 = arith.constant 0 : index
    %61 = vector.load %arg7[%c4_41, %c0_42, %c0_43] : memref<5x1x128xf32, #tpu.memory_space<vmem>>, vector<1x1x128xf32>
    %62 = vector.shape_cast %61 : vector<1x1x128xf32> to vector<1x128xf32>
    %63 = arith.truncf %58 : vector<16x128xf32> to vector<16x128xbf16>
    %cst_44 = arith.constant dense<0.000000e+00> : vector<16x128xf32>
    %64 = tpu.matmul %63, %60, %cst_44 {dimension_numbers = #tpu.dot_dimension_numbers<[1], [0], [0], [1], [0, 0, 1, 1], [], []>} : vector<16x128xbf16>, vector<128x128xbf16>, vector<16x128xf32> -> vector<16x128xf32>
    %65 = vector.broadcast %62 : vector<1x128xf32> to vector<16x128xf32>
    %66 = arith.addf %64, %65 : vector<16x128xf32>
    %cst_45 = arith.constant 1.000000e-01 : f32
    %67 = vector.broadcast %cst_45 : f32 to vector<16x128xf32>
    %68 = arith.mulf %67, %66 : vector<16x128xf32>
    %69 = arith.maximumf %66, %68 : vector<16x128xf32>
    %c0_46 = arith.constant 0 : index
    %c0_47 = arith.constant 0 : index
    %70 = vector.load %arg8[%c0_46, %c0_47] : memref<16x128xf32, #tpu.memory_space<vmem>>, vector<16x128xf32>
    tpu.vector_store %arg8[%c0_46, %c0_47], %69 {strides = array<i32>} : memref<16x128xf32, #tpu.memory_space<vmem>>, vector<16x128xf32>,
    return
  }
  func.func @transform_0(%arg0: i32) -> (i32, i32) {
    %c0_i32 = arith.constant 0 : i32
    %c0_i32_0 = arith.constant 0 : i32
    return %arg0, %c0_i32 : i32, i32
  }
  func.func @transform_1(%arg0: i32) -> (i32, i32) {
    %c0_i32 = arith.constant 0 : i32
    %c0_i32_0 = arith.constant 0 : i32
    return %arg0, %c0_i32 : i32, i32
  }
  func.func @transform_2(%arg0: i32) -> (i32, i32) {
    %c0_i32 = arith.constant 0 : i32
    %c0_i32_0 = arith.constant 0 : i32
    %c0_i32_1 = arith.constant 0 : i32
    return %c0_i32, %c0_i32_0 : i32, i32
  }
  func.func @transform_3(%arg0: i32) -> (i32, i32) {
    %c0_i32 = arith.constant 0 : i32
    %c0_i32_0 = arith.constant 0 : i32
    %c0_i32_1 = arith.constant 0 : i32
    return %c0_i32, %c0_i32_0 : i32, i32
  }
  func.func @transform_4(%arg0: i32) -> (i32, i32) {
    %c0_i32 = arith.constant 0 : i32
    %c0_i32_0 = arith.constant 0 : i32
    %c0_i32_1 = arith.constant 0 : i32
    return %c0_i32, %c0_i32_0 : i32, i32
  }
  func.func @transform_5(%arg0: i32) -> (i32, i32, i32) {
    %c0_i32 = arith.constant 0 : i32
    %c0_i32_0 = arith.constant 0 : i32
    %c0_i32_1 = arith.constant 0 : i32
    %c0_i32_2 = arith.constant 0 : i32
    return %c0_i32, %c0_i32_0, %c0_i32_1 : i32, i32, i32
  }
  func.func @transform_6(%arg0: i32) -> (i32, i32, i32) {
    %c0_i32 = arith.constant 0 : i32
    %c0_i32_0 = arith.constant 0 : i32
    %c0_i32_1 = arith.constant 0 : i32
    %c0_i32_2 = arith.constant 0 : i32
    return %c0_i32, %c0_i32_0, %c0_i32_1 : i32, i32, i32
  }
  func.func @transform_7(%arg0: i32) -> (i32, i32) {
    %c0_i32 = arith.constant 0 : i32
    %c0_i32_0 = arith.constant 0 : i32
    return %arg0, %c0_i32 : i32, i32
  }
}

module attributes {stable_mosaic.version = 11 : i64} {
  func.func @_fused_kernel(%arg0: i32, %arg1: memref<16x256xbf16, #tpu.memory_space<vmem>>, %arg2: memref<16x1xf32, #tpu.memory_space<vmem>>, %arg3: memref<256x128xbf16, #tpu.memory_space<vmem>>, %arg4: memref<1x128xf32, #tpu.memory_space<vmem>>, %arg5: memref<1x128xf32, #tpu.memory_space<vmem>>, %arg6: memref<5x128x128xbf16, #tpu.memory_space<vmem>>, %arg7: memref<5x1x128xf32, #tpu.memory_space<vmem>>, %arg8: memref<16x128xf32, #tpu.memory_space<vmem>>) attributes {dimension_semantics = [#tpu.dimension_semantics<parallel>], iteration_bounds = array<i64: 1>, scalar_prefetch = 0 : i64, scratch_operands = 0 : i64, tpu.core_type = #tpu.core_type<tc>, window_params = [{transform_indices = @transform_0, window_bounds = array<i64: 16, 256>}, {transform_indices = @transform_1, window_bounds = array<i64: 16, 1>}, {pipeline_mode = #tpu.pipeline_mode<synchronous>, transform_indices = @transform_2, window_bounds = array<i64: 256, 128>}, {pipeline_mode = #tpu.pipeline_mode<synchronous>, transform_indices = @transform_3, window_bounds = array<i64: 1, 128>}, {pipeline_mode = #tpu.pipeline_mode<synchronous>, transform_indices = @transform_4, window_bounds = array<i64: 1, 128>}, {pipeline_mode = #tpu.pipeline_mode<synchronous>, transform_indices = @transform_5, window_bounds = array<i64: 5, 128, 128>}, {pipeline_mode = #tpu.pipeline_mode<synchronous>, transform_indices = @transform_6, window_bounds = array<i64: 5, 1, 128>}, {transform_indices = @transform_7, window_bounds = array<i64: 16, 128>}]} {
    %c0 = arith.constant 0 : index
    %c0_0 = arith.constant 0 : index
    %0 = vector.load %arg1[%c0, %c0_0] : memref<16x256xbf16, #tpu.memory_space<vmem>>, vector<16x256xbf16>
    %c0_1 = arith.constant 0 : index
    %c0_2 = arith.constant 0 : index
    %1 = vector.load %arg3[%c0_1, %c0_2] : memref<256x128xbf16, #tpu.memory_space<vmem>>, vector<256x128xbf16>
    %cst = arith.constant dense<0.000000e+00> : vector<16x128xf32>
    %2 = tpu.matmul %0, %1, %cst {dimension_numbers = #tpu.dot_dimension_numbers<[1], [0], [0], [1], [0, 0, 1, 1], [], []>} : vector<16x256xbf16>, vector<256x128xbf16>, vector<16x128xf32> -> vector<16x128xf32>
    %c0_3 = arith.constant 0 : index
    %c0_4 = arith.constant 0 : index
    %3 = vector.load %arg2[%c0_3, %c0_4] : memref<16x1xf32, #tpu.memory_space<vmem>>, vector<16x1xf32>
    %c0_5 = arith.constant 0 : index
    %c0_6 = arith.constant 0 : index
    %4 = vector.load %arg4[%c0_5, %c0_6] : memref<1x128xf32, #tpu.memory_space<vmem>>, vector<1x128xf32>
    %5 = vector.broadcast %3 : vector<16x1xf32> to vector<16x128xf32>
    %6 = vector.broadcast %4 : vector<1x128xf32> to vector<16x128xf32>
    %7 = arith.mulf %5, %6 : vector<16x128xf32>
    %8 = arith.addf %2, %7 : vector<16x128xf32>
    %c0_7 = arith.constant 0 : index
    %c0_8 = arith.constant 0 : index
    %9 = vector.load %arg5[%c0_7, %c0_8] : memref<1x128xf32, #tpu.memory_space<vmem>>, vector<1x128xf32>
    %10 = vector.broadcast %9 : vector<1x128xf32> to vector<16x128xf32>
    %11 = arith.addf %8, %10 : vector<16x128xf32>
    %cst_9 = arith.constant 1.000000e-01 : f32
    %12 = vector.broadcast %cst_9 : f32 to vector<16x128xf32>
    %13 = arith.mulf %12, %11 : vector<16x128xf32>
    %14 = arith.maximumf %11, %13 : vector<16x128xf32>
    %c0_10 = arith.constant 0 : index
    %c0_11 = arith.constant 0 : index
    %c0_12 = arith.constant 0 : index
    %15 = vector.load %arg6[%c0_10, %c0_11, %c0_12] : memref<5x128x128xbf16, #tpu.memory_space<vmem>>, vector<1x128x128xbf16>
    %16 = vector.shape_cast %15 : vector<1x128x128xbf16> to vector<128x128xbf16>
    %c0_13 = arith.constant 0 : index
    %c0_14 = arith.constant 0 : index
    %c0_15 = arith.constant 0 : index
    %17 = vector.load %arg7[%c0_13, %c0_14, %c0_15] : memref<5x1x128xf32, #tpu.memory_space<vmem>>, vector<1x1x128xf32>
    %18 = vector.shape_cast %17 : vector<1x1x128xf32> to vector<1x128xf32>
    %19 = arith.truncf %14 : vector<16x128xf32> to vector<16x128xbf16>
    %cst_16 = arith.constant dense<0.000000e+00> : vector<16x128xf32>
    %20 = tpu.matmul %19, %16, %cst_16 {dimension_numbers = #tpu.dot_dimension_numbers<[1], [0], [0], [1], [0, 0, 1, 1], [], []>} : vector<16x128xbf16>, vector<128x128xbf16>, vector<16x128xf32> -> vector<16x128xf32>
    %21 = vector.broadcast %18 : vector<1x128xf32> to vector<16x128xf32>
    %22 = arith.addf %20, %21 : vector<16x128xf32>
    %cst_17 = arith.constant 1.000000e-01 : f32
    %23 = vector.broadcast %cst_17 : f32 to vector<16x128xf32>
    %24 = arith.mulf %23, %22 : vector<16x128xf32>
    %25 = arith.maximumf %22, %24 : vector<16x128xf32>
    %c1 = arith.constant 1 : index
    %c0_18 = arith.constant 0 : index
    %c0_19 = arith.constant 0 : index
    %26 = vector.load %arg6[%c1, %c0_18, %c0_19] : memref<5x128x128xbf16, #tpu.memory_space<vmem>>, vector<1x128x128xbf16>
    %27 = vector.shape_cast %26 : vector<1x128x128xbf16> to vector<128x128xbf16>
    %c1_20 = arith.constant 1 : index
    %c0_21 = arith.constant 0 : index
    %c0_22 = arith.constant 0 : index
    %28 = vector.load %arg7[%c1_20, %c0_21, %c0_22] : memref<5x1x128xf32, #tpu.memory_space<vmem>>, vector<1x1x128xf32>
    %29 = vector.shape_cast %28 : vector<1x1x128xf32> to vector<1x128xf32>
    %30 = arith.truncf %25 : vector<16x128xf32> to vector<16x128xbf16>
    %cst_23 = arith.constant dense<0.000000e+00> : vector<16x128xf32>
    %31 = tpu.matmul %30, %27, %cst_23 {dimension_numbers = #tpu.dot_dimension_numbers<[1], [0], [0], [1], [0, 0, 1, 1], [], []>} : vector<16x128xbf16>, vector<128x128xbf16>, vector<16x128xf32> -> vector<16x128xf32>
    %32 = vector.broadcast %29 : vector<1x128xf32> to vector<16x128xf32>
    %33 = arith.addf %31, %32 : vector<16x128xf32>
    %cst_24 = arith.constant 1.000000e-01 : f32
    %34 = vector.broadcast %cst_24 : f32 to vector<16x128xf32>
    %35 = arith.mulf %34, %33 : vector<16x128xf32>
    %36 = arith.maximumf %33, %35 : vector<16x128xf32>
    %c2 = arith.constant 2 : index
    %c0_25 = arith.constant 0 : index
    %c0_26 = arith.constant 0 : index
    %37 = vector.load %arg6[%c2, %c0_25, %c0_26] : memref<5x128x128xbf16, #tpu.memory_space<vmem>>, vector<1x128x128xbf16>
    %38 = vector.shape_cast %37 : vector<1x128x128xbf16> to vector<128x128xbf16>
    %c2_27 = arith.constant 2 : index
    %c0_28 = arith.constant 0 : index
    %c0_29 = arith.constant 0 : index
    %39 = vector.load %arg7[%c2_27, %c0_28, %c0_29] : memref<5x1x128xf32, #tpu.memory_space<vmem>>, vector<1x1x128xf32>
    %40 = vector.shape_cast %39 : vector<1x1x128xf32> to vector<1x128xf32>
    %41 = arith.truncf %36 : vector<16x128xf32> to vector<16x128xbf16>
    %cst_30 = arith.constant dense<0.000000e+00> : vector<16x128xf32>
    %42 = tpu.matmul %41, %38, %cst_30 {dimension_numbers = #tpu.dot_dimension_numbers<[1], [0], [0], [1], [0, 0, 1, 1], [], []>} : vector<16x128xbf16>, vector<128x128xbf16>, vector<16x128xf32> -> vector<16x128xf32>
    %43 = vector.broadcast %40 : vector<1x128xf32> to vector<16x128xf32>
    %44 = arith.addf %42, %43 : vector<16x128xf32>
    %cst_31 = arith.constant 1.000000e-01 : f32
    %45 = vector.broadcast %cst_31 : f32 to vector<16x128xf32>
    %46 = arith.mulf %45, %44 : vector<16x128xf32>
    %47 = arith.maximumf %44, %46 : vector<16x128xf32>
    %c3 = arith.constant 3 : index
    %c0_32 = arith.constant 0 : index
    %c0_33 = arith.constant 0 : index
    %48 = vector.load %arg6[%c3, %c0_32, %c0_33] : memref<5x128x128xbf16, #tpu.memory_space<vmem>>, vector<1x128x128xbf16>
    %49 = vector.shape_cast %48 : vector<1x128x128xbf16> to vector<128x128xbf16>
    %c3_34 = arith.constant 3 : index
    %c0_35 = arith.constant 0 : index
    %c0_36 = arith.constant 0 : index
    %50 = vector.load %arg7[%c3_34, %c0_35, %c0_36] : memref<5x1x128xf32, #tpu.memory_space<vmem>>, vector<1x1x128xf32>
    %51 = vector.shape_cast %50 : vector<1x1x128xf32> to vector<1x128xf32>
    %52 = arith.truncf %47 : vector<16x128xf32> to vector<16x128xbf16>
    %cst_37 = arith.constant dense<0.000000e+00> : vector<16x128xf32>
    %53 = tpu.matmul %52, %49, %cst_37 {dimension_numbers = #tpu.dot_dimension_numbers<[1], [0], [0], [1], [0, 0, 1, 1], [], []>} : vector<16x128xbf16>, vector<128x128xbf16>, vector<16x128xf32> -> vector<16x128xf32>
    %54 = vector.broadcast %51 : vector<1x128xf32> to vector<16x128xf32>
    %55 = arith.addf %53, %54 : vector<16x128xf32>
    %cst_38 = arith.constant 1.000000e-01 : f32
    %56 = vector.broadcast %cst_38 : f32 to vector<16x128xf32>
    %57 = arith.mulf %56, %55 : vector<16x128xf32>
    %58 = arith.maximumf %55, %57 : vector<16x128xf32>
    %c4 = arith.constant 4 : index
    %c0_39 = arith.constant 0 : index
    %c0_40 = arith.constant 0 : index
    %59 = vector.load %arg6[%c4, %c0_39, %c0_40] : memref<5x128x128xbf16, #tpu.memory_space<vmem>>, vector<1x128x128xbf16>
    %60 = vector.shape_cast %59 : vector<1x128x128xbf16> to vector<128x128xbf16>
    %c4_41 = arith.constant 4 : index
    %c0_42 = arith.constant 0 : index
    %c0_43 = arith.constant 0 : index
    %61 = vector.load %arg7[%c4_41, %c0_42, %c0_43] : memref<5x1x128xf32, #tpu.memory_space<vmem>>, vector<1x1x128xf32>
    %62 = vector.shape_cast %61 : vector<1x1x128xf32> to vector<1x128xf32>
    %63 = arith.truncf %58 : vector<16x128xf32> to vector<16x128xbf16>
    %cst_44 = arith.constant dense<0.000000e+00> : vector<16x128xf32>
    %64 = tpu.matmul %63, %60, %cst_44 {dimension_numbers = #tpu.dot_dimension_numbers<[1], [0], [0], [1], [0, 0, 1, 1], [], []>} : vector<16x128xbf16>, vector<128x128xbf16>, vector<16x128xf32> -> vector<16x128xf32>
    %65 = vector.broadcast %62 : vector<1x128xf32> to vector<16x128xf32>
    %66 = arith.addf %64, %65 : vector<16x128xf32>
    %cst_45 = arith.constant 1.000000e-01 : f32
    %67 = vector.broadcast %cst_45 : f32 to vector<16x128xf32>
    %68 = arith.mulf %67, %66 : vector<16x128xf32>
    %69 = arith.maximumf %66, %68 : vector<16x128xf32>
    %c0_46 = arith.constant 0 : index
    %c0_47 = arith.constant 0 : index
    %70 = vector.load %arg8[%c0_46, %c0_47] : memref<16x128xf32, #tpu.memory_space<vmem>>, vector<16x128xf32>
    tpu.vector_store %arg8[%c0_46, %c0_47], %69 {strides = array<i32>} : memref<16x128xf32, #tpu.memory_space<vmem>>, vector<16x128xf32>,
    return
  }
  func.func @transform_0(%arg0: i32) -> (i32, i32) {
    %c0_i32 = arith.constant 0 : i32
    %c0_i32_0 = arith.constant 0 : i32
    return %arg0, %c0_i32 : i32, i32
  }
  func.func @transform_1(%arg0: i32) -> (i32, i32) {
    %c0_i32 = arith.constant 0 : i32
    %c0_i32_0 = arith.constant 0 : i32
    return %arg0, %c0_i32 : i32, i32
  }
  func.func @transform_2(%arg0: i32) -> (i32, i32) {
    %c0_i32 = arith.constant 0 : i32
    %c0_i32_0 = arith.constant 0 : i32
    %c0_i32_1 = arith.constant 0 : i32
    return %c0_i32, %c0_i32_0 : i32, i32
  }
  func.func @transform_3(%arg0: i32) -> (i32, i32) {
    %c0_i32 = arith.constant 0 : i32
    %c0_i32_0 = arith.constant 0 : i32
    %c0_i32_1 = arith.constant 0 : i32
    return %c0_i32, %c0_i32_0 : i32, i32
  }
  func.func @transform_4(%arg0: i32) -> (i32, i32) {
    %c0_i32 = arith.constant 0 : i32
    %c0_i32_0 = arith.constant 0 : i32
    %c0_i32_1 = arith.constant 0 : i32
    return %c0_i32, %c0_i32_0 : i32, i32
  }
  func.func @transform_5(%arg0: i32) -> (i32, i32, i32) {
    %c0_i32 = arith.constant 0 : i32
    %c0_i32_0 = arith.constant 0 : i32
    %c0_i32_1 = arith.constant 0 : i32
    %c0_i32_2 = arith.constant 0 : i32
    return %c0_i32, %c0_i32_0, %c0_i32_1 : i32, i32, i32
  }
  func.func @transform_6(%arg0: i32) -> (i32, i32, i32) {
    %c0_i32 = arith.constant 0 : i32
    %c0_i32_0 = arith.constant 0 : i32
    %c0_i32_1 = arith.constant 0 : i32
    %c0_i32_2 = arith.constant 0 : i32
    return %c0_i32, %c0_i32_0, %c0_i32_1 : i32, i32, i32
  }
  func.func @transform_7(%arg0: i32) -> (i32, i32) {
    %c0_i32 = arith.constant 0 : i32
    %c0_i32_0 = arith.constant 0 : i32
    return %arg0, %c0_i32 : i32, i32
  }
}

</mosaic_0001>

<bundles_post_ra>
// kernel: tpu_custom_call.1
= control target key start
LH: loop header
LB: loop body
LE: loop exit
PB: predicated region body
PF: predicated region fallthrough
CT: control target
= control target key end

     0   :  { %12 = vsyncpa [#allocation3], 0  ;;  %s1398_s0 = inlined_call_operand.vmem [shape: bf16[16,256], index: 0, kind: input, shape index: {}]   ;;  %s1399_s1 = inlined_call_operand.vmem [shape: f32[16,1], index: 1, kind: input, shape index: {}]   ;;  %s1400_s2 = inlined_call_operand.hbm [shape: bf16[256,128], index: 2, kind: input, shape index: {}]   ;;  %s1401_s3 = inlined_call_operand.vmem [shape: f32[1,128], index: 3, kind: input, shape index: {}]   ;;  %s1402_s4 = inlined_call_operand.vmem [shape: f32[1,128], index: 4, kind: input, shape index: {}]   ;;  %s1403_s5 = inlined_call_operand.hbm [shape: bf16[5,128,128], index: 5, kind: input, shape index: {}]   ;;  %s1404_s6 = inlined_call_operand.vmem [shape: f32[5,1,128], index: 6, kind: input, shape index: {}]   ;;  %s1405_s7 = inlined_call_operand.hbm [shape: f32[16,128], index: 7, kind: output, shape index: {}]  }
   0x1   :  { %13 = vsyncpa [#allocation6], 0 }
   0x2   :  { %14 = vsyncpa [#allocation4], 0  ;;  %s1256_s24 = smov [#allocation2]  }
   0x3   :  { %s24_s25 = sshll.u32 %s1256_s24, 4  ;;  %s25_s25 = int_to_ptr.vmem [resolvable:$true] %s24_s25 }
   0x4   :  { %s1198_s26 = scalar_lea.vmem %s25_s25, 2048  ;;  %p1203_p1 = scmp.lt.s32.totalorder %s25_s25, %s25_s25 }
   0x5   :  { %p1199_p0 = scmp.ne.s32.totalorder %s25_s25, %s1198_s26  ;;  %p1204_p2 = scmp.lt.s32.totalorder %s1198_s26, %s1198_s26 }
   0x7   :  { %p1205_p3 = por %p1204_p2, %p1203_p1 }
   0x9   :  { %p1206_p4 = pnand %p1205_p3, %p1199_p0 }
   0xb   :  { %1209 = shalt.err (!%p1206_p4)
}
   0xc   :  { %s1257_s27 = smov 64   ;;  %s1258_s28 = smov 4  }
   0xd   :  { %30 = dma.hbm_to_vmem [thread:$0]  %s1400_s2, 2048, %s25_s25, [#allocation3], %s1257_s27, %s1257_s27, %s1258_s28  }
   0xe   :  { %s1259_s8 = smov [#allocation5]  }
   0xf   :  { %s40_s9 = sshll.u32 %s1259_s8, 4  ;;  %s41_s9 = int_to_ptr.vmem [resolvable:$true] %s40_s9 }
  0x10   :  { %s1218_s10 = scalar_lea.vmem %s41_s9, 5120  ;;  %p1223_p6 = scmp.lt.s32.totalorder %s41_s9, %s41_s9 }
  0x11   :  { %p1219_p5 = scmp.ne.s32.totalorder %s41_s9, %s1218_s10  ;;  %p1224_p7 = scmp.lt.s32.totalorder %s1218_s10, %s1218_s10 }
  0x13   :  { %p1225_p8 = por %p1224_p7, %p1223_p6 }
  0x15   :  { %p1226_p9 = pnand %p1225_p8, %p1219_p5 }
  0x17   :  { %1229 = shalt.err (!%p1226_p9)
}
  0x18   :  { %46 = dma.hbm_to_vmem [thread:$0]  %s1403_s5, 5120, %s41_s9, [#allocation6], %s1257_s27, %s1257_s27, %s1258_s28  }
  0x19   :  { %1250 = dma.done.wait [#allocation3], 2048  }
  0x1a   :  { %1251 = vsyncadd [#allocation3], 4294965248 }
  0x1b   :  { %1252 = dma.done.wait [#allocation6], 5120  }
  0x1c   :  { %1253 = vsyncadd [#allocation6], 4294962176  ;;  %v1260_v0 = vmov 0   ;;  %v1261_v1 = vmov 0.0   ;;  %v1131_v2 = vld [vmem:[#allocation2 + $0x78] sm:$0xff]   ;;  %v1133_v4 = vld [vmem:[#allocation2 + $0x70] sm:$0xff]  }
  0x1d   :  { %1130 = vset.pattern.permute.xlu0 %v1260_v0  ;;  %1020 = vmatprep.subr.bf16.mxu1 %v1261_v1  ;;  %v1132_v3 = vld [vmem:[#allocation2 + $0x38] sm:$0xff]   ;;  %v1134_v5 = vld [vmem:[#allocation2 + $0x30] sm:$0xff]   ;;  %v1135_v6 = vld [vmem:[#allocation2 + $0x68] sm:$0xff]   ;;  %vm1262_vm0 = vmmov 0   ;;  %s1263_s29 = smov [#allocation7]  }
  0x1e   :  { %953 = vmatprep.subr.bf16.mxu0 %v1131_v2  ;;  %v1136_v7 = vld [vmem:[#allocation2 + $0x28] sm:$0xff]   ;;  %v1137_v8 = vld [vmem:[#allocation2 + $0x60] sm:$0xff]   ;;  %v1139_v10 = vld [vmem:[#allocation2 + $0x58] sm:$0xff]   ;;  %1036 = vmatprep.mubr.msk.bf16.mxu1 %vm1262_vm0, %v1261_v1  ;;  %s871_s30 = sshll.u32 %s1263_s29, 4  ;;  %s872_s30 = int_to_ptr.vmem [resolvable:$true] %s871_s30 }
  0x1f   :  { %954 = vmatpush3.bf16.msra.mxu0 %v1132_v3  ;;  %v1138_v9 = vld [vmem:[#allocation2 + $0x20] sm:$0xff]   ;;  %v1140_v11 = vld [vmem:[#allocation2 + $0x18] sm:$0xff]   ;;  %v1141_v12 = vld [vmem:[#allocation2 + $0x50] sm:$0xff]   ;;  %s1230_s8 = scalar_lea.vmem %s872_s30, 256  ;;  %p1235_p11 = scmp.lt.s32.totalorder %s872_s30, %s872_s30 }
  0x20   :  { %955 = vmatprep.subr.bf16.mxu0 %v1133_v4  ;;  %v1142_v13 = vld [vmem:[#allocation2 + $0x10] sm:$0xff]   ;;  %v1149_v14 = vld [vmem:[%s1398_s0 + $0x4] ss:$8 sps:$4 sm:$0xff]   ;;  %v1150_v17 = vld [vmem:[#allocation5 + $0x38] sm:$0xff]   ;;  %p1231_p10 = scmp.ne.s32.totalorder %s872_s30, %s1230_s8  ;;  %p1236_p12 = scmp.lt.s32.totalorder %s1230_s8, %s1230_s8 }
  0x21   :  { %v90_v15 = vld [vmem:[%s1399_s1] sm:$0xff]  ;;  %v1143_v16 = vld [vmem:[#allocation2 + $0x48] sm:$0xff]   ;;  %249 = vmatprep.mubr.bf16.mxu0 %v1149_v14  ;;  %1021 = vmatpush3.bf16.msra.mxu1 %v1150_v17  ;;  %v1151_v19 = vld [vmem:[#allocation5 + $0x30] sm:$0xff]  }
  0x22   :  { %95 = vperm.xlu0 %1130, %v90_v15   ;;  %v91_v18 = vld [vmem:[%s1399_s1 + $0x8] sm:$0xff]  ;;  %1022 = vmatprep.subr.bf16.mxu1 %v1261_v1  ;;  %v1145_v21 = vld [vmem:[#allocation2 + $0x40] sm:$0xff]   ;;  %v1154_v26 = vld [vmem:[#allocation5 + $0x18] sm:$0xff]   ;;  %p1237_p13 = por %p1236_p12, %p1235_p11 }
  0x23   :  { %956 = vmatpush3.bf16.msra.mxu0 %v1134_v5  ;;  %v1144_v20 = vld [vmem:[#allocation2 + $0x8] sm:$0xff]   ;;  %v1146_v23 = vld [vmem:[#allocation2] sm:$0xff]   ;;  %v1155_v27 = vld [vmem:[#allocation5 + $0x10] sm:$0xff]  }
  0x24   :  { %957 = vmatprep.subr.bf16.mxu0 %v1135_v6  ;;  %v1152_v22 = vld [vmem:[#allocation5 + $0x28] sm:$0xff]   ;;  %v1153_v25 = vld [vmem:[#allocation5 + $0x20] sm:$0xff]   ;;  %v1158_v30 = vld [vmem:[#allocation5 + $0x78] sm:$0xff]   ;;  %p1238_p0 = pnand %p1237_p13, %p1231_p10 }
  0x25   :  { %1023 = vmatpush3.bf16.msra.mxu1 %v1151_v19  ;;  %v1147_v24 = vld [vmem:[%s1398_s0] ss:$8 sps:$4 sm:$0xff]   ;;  %v1159_v31 = vld [vmem:[#allocation5 + $0x70] sm:$0xff]   ;;  %v1162_v34 = vld [vmem:[#allocation5 + $0x58] sm:$0xff]  }
  0x26   :  { %100 = vperm.xlu0 %1130, %v91_v18   ;;  %1024 = vmatprep.subr.bf16.mxu1 %v1261_v1  ;;  %v1156_v28 = vld [vmem:[#allocation5 + $0x8] sm:$0xff]   ;;  %v1157_v29 = vld [vmem:[#allocation5] sm:$0xff]   ;;  %v1163_v56 = vld [vmem:[#allocation5 + $0x50] sm:$0xff]  }
  0x27   :  { %958 = vmatpush3.bf16.msra.mxu0 %v1136_v7  ;;  %v1160_v32 = vld [vmem:[#allocation5 + $0x68] sm:$0xff]   ;;  %v1161_v33 = vld [vmem:[#allocation5 + $0x60] sm:$0xff]   ;;  %v1166_v59 = vld [vmem:[#allocation5 + $0xb8] sm:$0xff]  }
  0x28   :  { %959 = vmatprep.subr.bf16.mxu0 %v1137_v8  ;;  %v884_v35 = vld [vmem:[%s1401_s3] ss:$0 sm:$0xff]  ;;  %v1164_v57 = vld [vmem:[#allocation5 + $0x48] sm:$0xff]   ;;  %v1167_v60 = vld [vmem:[#allocation5 + $0xb0] sm:$0xff]  }
  0x29   :  { %1025 = vmatpush3.bf16.msra.mxu1 %v1152_v22  ;;  %v903_v42 = vld [vmem:[%s1402_s4] ss:$0 sm:$0xff]  ;;  %v1168_v61 = vld [vmem:[#allocation5 + $0xa8] sm:$0xff]   ;;  %v1170_v63 = vld [vmem:[#allocation5 + $0x98] sm:$0xff]  }
  0x2a   :  { %1026 = vmatprep.subr.bf16.mxu1 %v1261_v1  ;;  %v1165_v58 = vld [vmem:[#allocation5 + $0x40] sm:$0xff]   ;;  %v1172_v14 = vld [vmem:[#allocation5 + $0x88] sm:$0xff]   ;;  %v1175_v17 = vld [vmem:[#allocation5 + $0xf0] sm:$0xff]  }
  0x2b   :  { %960 = vmatpush3.bf16.msra.mxu0 %v1138_v9  ;;  %v1169_v62 = vld [vmem:[#allocation5 + $0xa0] sm:$0xff]   ;;  %v1176_v18 = vld [vmem:[#allocation5 + $0xe8] sm:$0xff]  }
  0x2c   :  { %961 = vmatprep.subr.bf16.mxu0 %v1139_v10  ;;  %v904_v0 = vld [vmem:[%s1404_s6] ss:$0 sm:$0xff] }
  0x2d   :  { %1027 = vmatpush3.bf16.msra.mxu1 %v1153_v25  ;;  %v1173_v15 = vld [vmem:[#allocation5 + $0x80] sm:$0xff]  }
  0x2e   :  { %1028 = vmatprep.subr.bf16.mxu1 %v1261_v1  ;;  %v1177_v19 = vld [vmem:[#allocation5 + $0xe0] sm:$0xff]  }
  0x2f   :  { %962 = vmatpush3.bf16.msra.mxu0 %v1140_v11 }
  0x30   :  { %963 = vmatprep.subr.bf16.mxu0 %v1141_v12 }
  0x31   :  { %1029 = vmatpush3.bf16.msra.mxu1 %v1154_v26 }
  0x32   :  { %1030 = vmatprep.subr.bf16.mxu1 %v1261_v1 }
  0x33   :  { %964 = vmatpush3.bf16.msra.mxu0 %v1142_v13  ;;  %v1171_v13 = vld [vmem:[#allocation5 + $0x90] sm:$0xff]  }
  0x34   :  { %965 = vmatprep.subr.bf16.mxu0 %v1143_v16  ;;  %v1174_v16 = vld [vmem:[#allocation5 + $0xf8] sm:$0xff]  }
  0x35   :  { %1031 = vmatpush3.bf16.msra.mxu1 %v1155_v27 }
  0x36   :  { %1032 = vmatprep.subr.bf16.mxu1 %v1261_v1 }
  0x37   :  { %966 = vmatpush3.bf16.msra.mxu0 %v1144_v20  ;;  %v1178_v20 = vld [vmem:[#allocation5 + $0xd8] sm:$0xff]  }
  0x38   :  { %967 = vmatprep.subr.bf16.mxu0 %v1145_v21  ;;  %v914_v21 = vld [vmem:[%s1404_s6 + $0x1] ss:$0 sm:$0xff] }
  0x39   :  { %1033 = vmatpush3.bf16.msra.mxu1 %v1156_v28 }
  0x3a   :  { %1034 = vmatprep.subr.bf16.mxu1 %v1261_v1 }
  0x3b   :  { %968 = vmatpush3.bf16.msra.mxu0 %v1146_v23 }
  0x3c   :  { %1040 = vmatprep.subr.bf16.mxu0 %v1261_v1 }
  0x3d   :  { %1035 = vmatpush3.bf16.msra.mxu1 %v1157_v29 }
  0x3e   :  { %250 = vmatmul.mubr.bf16.vlgmr.msra.gmra.mxu0 %v1147_v24  ;;  %1060 = vmatprep.subr.bf16.mxu1 %v1261_v1 }
  0x3f   :  { %1056 = vmatprep.mubr.msk.bf16.mxu0 %vm1262_vm0, %v1261_v1  ;;  %1041 = vmatpush3.bf16.msra.mxu0 %v1158_v30 }
  0x40   :  { %1042 = vmatprep.subr.bf16.mxu0 %v1261_v1 }
  0x43   :  { %1043 = vmatpush3.bf16.msra.mxu0 %v1159_v31 }
  0x44   :  { %1044 = vmatprep.subr.bf16.mxu0 %v1261_v1 }
  0x47   :  { %1045 = vmatpush3.bf16.msra.mxu0 %v1160_v32 }
  0x48   :  { %1046 = vmatprep.subr.bf16.mxu0 %v1261_v1 }
  0x4b   :  { %1047 = vmatpush3.bf16.msra.mxu0 %v1161_v33  ;;  %v1179_v33 = vld [vmem:[#allocation5 + $0xd0] sm:$0xff]  }
  0x4c   :  { %1048 = vmatprep.subr.bf16.mxu0 %v1261_v1 }
  0x4f   :  { %1049 = vmatpush3.bf16.msra.mxu0 %v1162_v34  ;;  %v1180_v34 = vld [vmem:[#allocation5 + $0xc8] sm:$0xff]  }
  0x50   :  { %1050 = vmatprep.subr.bf16.mxu0 %v1261_v1 }
  0x53   :  { %1051 = vmatpush3.bf16.msra.mxu0 %v1163_v56  ;;  %v934_v56 = vld [vmem:[%s1404_s6 + $0x3] ss:$0 sm:$0xff] }
  0x54   :  { %1052 = vmatprep.subr.bf16.mxu0 %v1261_v1 }
  0x57   :  { %1053 = vmatpush3.bf16.msra.mxu0 %v1164_v57 }
  0x58   :  { %1054 = vmatprep.subr.bf16.mxu0 %v1261_v1 }
  0x5b   :  { %1055 = vmatpush3.bf16.msra.mxu0 %v1165_v58 }
  0x5c   :  { %1080 = vmatprep.subr.bf16.mxu0 %v1261_v1 }
  0x9d   :  { %v96_v36 = vpop.permute.xlu0 %95 }
  0x9e   :  { %v109_v38 = vmul.f32 %v884_v35, %v96_v36  ;;  %v1182_v36 = vld [vmem:[#allocation5 + $0x138] sm:$0xff]  }
  0xa1   :  { %v101_v41 = vpop.permute.xlu0 %100 }
  0xa2   :  { %v110_v46 = vmul.f32 %v884_v35, %v101_v41  ;;  %v1181_v35 = vld [vmem:[#allocation5 + $0xc0] sm:$0xff]  }
  0xa3   :  { %v924_v41 = vld [vmem:[%s1404_s6 + $0x2] ss:$0 sm:$0xff] }
  0xfe   :  { %v969_v37 = vpop.f32.mrf.mxu0 }
 0x100   :  { %v970_v39 = vpop.f32.mrf.mxu0 }
 0x101   :  { %v971_v40 = vadd.f32 %v970_v39, %v969_v37  ;;  %v1183_v37 = vld [vmem:[#allocation5 + $0x130] sm:$0xff]   ;;  %v1185_v39 = vld [vmem:[#allocation5 + $0x120] sm:$0xff]  }
 0x102   :  { %v972_v43 = vpop.f32.mrf.mxu0 }
 0x103   :  { %v252_v44 = vadd.f32 %v971_v40, %v109_v38  ;;  %v1184_v38 = vld [vmem:[#allocation5 + $0x128] sm:$0xff]   ;;  %v1186_v40 = vld [vmem:[#allocation5 + $0x118] sm:$0xff]  }
 0x104   :  { %v973_v45 = vpop.f32.mrf.mxu0 }
 0x105   :  { %v265_v47 = vadd.f32 %v903_v42, %v252_v44  ;;  %v974_v48 = vadd.f32 %v973_v45, %v972_v43 }
 0x107   :  { %v255_v49 = vadd.f32 %v974_v48, %v110_v46  ;;  %v267_v50 = vmul.f32 0.1, %v265_v47 }
 0x109   :  { %v266_v51 = vadd.f32 %v903_v42, %v255_v49  ;;  %v269_v53 = vmax.f32 %v265_v47, %v267_v50 }
 0x10b   :  { %v268_v52 = vmul.f32 0.1, %v266_v51 }
 0x10d   :  { %v270_v54 = vmax.f32 %v266_v51, %v268_v52 }
 0x10f   :  { %v288_v55 = vpack.c.bf16 %v270_v54, %v269_v53  ;;  %v1187_v53 = vld [vmem:[#allocation5 + $0x110] sm:$0xff]   ;;  %v1188_v54 = vld [vmem:[#allocation5 + $0x108] sm:$0xff]  }
 0x111   :  { %1037 = vmatmul.mubr.bf16.vlgmr.msra.gmra.mxu1 %v288_v55  ;;  %v1189_v55 = vld [vmem:[#allocation5 + $0x100] sm:$0xff]  }
 0x112   :  { %1076 = vmatprep.mubr.msk.bf16.mxu1 %vm1262_vm0, %v1261_v1  ;;  %1061 = vmatpush3.bf16.msra.mxu1 %v1166_v59 }
 0x113   :  { %1062 = vmatprep.subr.bf16.mxu1 %v1261_v1 }
 0x116   :  { %1063 = vmatpush3.bf16.msra.mxu1 %v1167_v60 }
 0x117   :  { %1064 = vmatprep.subr.bf16.mxu1 %v1261_v1 }
 0x11a   :  { %1065 = vmatpush3.bf16.msra.mxu1 %v1168_v61 }
 0x11b   :  { %1066 = vmatprep.subr.bf16.mxu1 %v1261_v1 }
 0x11e   :  { %1067 = vmatpush3.bf16.msra.mxu1 %v1169_v62 }
 0x11f   :  { %1068 = vmatprep.subr.bf16.mxu1 %v1261_v1 }
 0x122   :  { %1069 = vmatpush3.bf16.msra.mxu1 %v1170_v63 }
 0x123   :  { %1070 = vmatprep.subr.bf16.mxu1 %v1261_v1 }
 0x126   :  { %1071 = vmatpush3.bf16.msra.mxu1 %v1171_v13 }
 0x127   :  { %1072 = vmatprep.subr.bf16.mxu1 %v1261_v1 }
 0x12a   :  { %1073 = vmatpush3.bf16.msra.mxu1 %v1172_v14 }
 0x12b   :  { %1074 = vmatprep.subr.bf16.mxu1 %v1261_v1 }
 0x12e   :  { %1075 = vmatpush3.bf16.msra.mxu1 %v1173_v15 }
 0x12f   :  { %1100 = vmatprep.subr.bf16.mxu1 %v1261_v1 }
 0x1d1   :  { %v377_v2 = vpop.f32.mrf.mxu1 }
 0x1d2   :  { %v378_v3 = vadd.f32 %v904_v0, %v377_v2 }
 0x1d3   :  { %v1038_v4 = vpop.f32.mrf.mxu1 }
 0x1d4   :  { %v384_v6 = vmul.f32 0.1, %v378_v3 }
 0x1d5   :  { %v380_v5 = vpop.f32.mrf.mxu1 }
 0x1d6   :  { %v381_v7 = vadd.f32 %v904_v0, %v380_v5  ;;  %v386_v10 = vmax.f32 %v378_v3, %v384_v6 }
 0x1d7   :  { %v1039_v8 = vpop.f32.mrf.mxu1 }
 0x1d8   :  { %v385_v9 = vmul.f32 0.1, %v381_v7 }
 0x1da   :  { %v387_v11 = vmax.f32 %v381_v7, %v385_v9 }
 0x1dc   :  { %v407_v12 = vpack.c.bf16 %v387_v11, %v386_v10 }
 0x1de   :  { %1057 = vmatmul.mubr.bf16.vlgmr.msra.gmra.mxu0 %v407_v12 }
 0x1df   :  { %1096 = vmatprep.mubr.msk.bf16.mxu0 %vm1262_vm0, %v1261_v1  ;;  %1081 = vmatpush3.bf16.msra.mxu0 %v1174_v16 }
 0x1e0   :  { %1082 = vmatprep.subr.bf16.mxu0 %v1261_v1 }
 0x1e3   :  { %1083 = vmatpush3.bf16.msra.mxu0 %v1175_v17 }
 0x1e4   :  { %1084 = vmatprep.subr.bf16.mxu0 %v1261_v1 }
 0x1e7   :  { %1085 = vmatpush3.bf16.msra.mxu0 %v1176_v18 }
 0x1e8   :  { %1086 = vmatprep.subr.bf16.mxu0 %v1261_v1 }
 0x1eb   :  { %1087 = vmatpush3.bf16.msra.mxu0 %v1177_v19 }
 0x1ec   :  { %1088 = vmatprep.subr.bf16.mxu0 %v1261_v1 }
 0x1ef   :  { %1089 = vmatpush3.bf16.msra.mxu0 %v1178_v20 }
 0x1f0   :  { %1090 = vmatprep.subr.bf16.mxu0 %v1261_v1 }
 0x1f3   :  { %1091 = vmatpush3.bf16.msra.mxu0 %v1179_v33 }
 0x1f4   :  { %1092 = vmatprep.subr.bf16.mxu0 %v1261_v1 }
 0x1f7   :  { %1093 = vmatpush3.bf16.msra.mxu0 %v1180_v34 }
 0x1f8   :  { %1094 = vmatprep.subr.bf16.mxu0 %v1261_v1 }
 0x1fb   :  { %1095 = vmatpush3.bf16.msra.mxu0 %v1181_v35 }
 0x29e   :  { %v496_v22 = vpop.f32.mrf.mxu0 }
 0x29f   :  { %v497_v23 = vadd.f32 %v914_v21, %v496_v22 }
 0x2a0   :  { %v1058_v24 = vpop.f32.mrf.mxu0 }
 0x2a1   :  { %v503_v26 = vmul.f32 0.1, %v497_v23 }
 0x2a2   :  { %v499_v25 = vpop.f32.mrf.mxu0 }
 0x2a3   :  { %v500_v27 = vadd.f32 %v914_v21, %v499_v25  ;;  %v505_v30 = vmax.f32 %v497_v23, %v503_v26 }
 0x2a4   :  { %v1059_v28 = vpop.f32.mrf.mxu0 }
 0x2a5   :  { %v504_v29 = vmul.f32 0.1, %v500_v27 }
 0x2a7   :  { %v506_v31 = vmax.f32 %v500_v27, %v504_v29 }
 0x2a9   :  { %v526_v32 = vpack.c.bf16 %v506_v31, %v505_v30 }
 0x2ab   :  { %1077 = vmatmul.mubr.bf16.vlgmr.msra.gmra.mxu1 %v526_v32 }
 0x2ac   :  { %1116 = vmatprep.mubr.msk.bf16.mxu1 %vm1262_vm0, %v1261_v1  ;;  %1101 = vmatpush3.bf16.msra.mxu1 %v1182_v36 }
 0x2ad   :  { %1102 = vmatprep.subr.bf16.mxu1 %v1261_v1 }
 0x2b0   :  { %1103 = vmatpush3.bf16.msra.mxu1 %v1183_v37 }
 0x2b1   :  { %1104 = vmatprep.subr.bf16.mxu1 %v1261_v1 }
 0x2b4   :  { %1105 = vmatpush3.bf16.msra.mxu1 %v1184_v38 }
 0x2b5   :  { %1106 = vmatprep.subr.bf16.mxu1 %v1261_v1 }
 0x2b8   :  { %1107 = vmatpush3.bf16.msra.mxu1 %v1185_v39 }
 0x2b9   :  { %1108 = vmatprep.subr.bf16.mxu1 %v1261_v1 }
 0x2bc   :  { %1109 = vmatpush3.bf16.msra.mxu1 %v1186_v40 }
 0x2bd   :  { %1110 = vmatprep.subr.bf16.mxu1 %v1261_v1 }
 0x2c0   :  { %1111 = vmatpush3.bf16.msra.mxu1 %v1187_v53 }
 0x2c1   :  { %1112 = vmatprep.subr.bf16.mxu1 %v1261_v1 }
 0x2c4   :  { %1113 = vmatpush3.bf16.msra.mxu1 %v1188_v54 }
 0x2c5   :  { %1114 = vmatprep.subr.bf16.mxu1 %v1261_v1  ;;  %v944_v1 = vld [vmem:[%s1404_s6 + $0x4] ss:$0 sm:$0xff] }
 0x2c8   :  { %1115 = vmatpush3.bf16.msra.mxu1 %v1189_v55 }
 0x36b   :  { %v615_v42 = vpop.f32.mrf.mxu1 }
 0x36c   :  { %v616_v43 = vadd.f32 %v924_v41, %v615_v42 }
 0x36d   :  { %v1078_v44 = vpop.f32.mrf.mxu1 }
 0x36e   :  { %v622_v46 = vmul.f32 0.1, %v616_v43 }
 0x36f   :  { %v618_v45 = vpop.f32.mrf.mxu1 }
 0x370   :  { %v619_v47 = vadd.f32 %v924_v41, %v618_v45  ;;  %v624_v50 = vmax.f32 %v616_v43, %v622_v46 }
 0x371   :  { %v1079_v48 = vpop.f32.mrf.mxu1 }
 0x372   :  { %v623_v49 = vmul.f32 0.1, %v619_v47 }
 0x374   :  { %v625_v51 = vmax.f32 %v619_v47, %v623_v49 }
 0x376   :  { %v645_v52 = vpack.c.bf16 %v625_v51, %v624_v50 }
 0x378   :  { %1097 = vmatmul.mubr.bf16.vlgmr.msra.gmra.mxu0 %v645_v52 }
 0x438   :  { %v734_v57 = vpop.f32.mrf.mxu0 }
 0x439   :  { %v735_v58 = vadd.f32 %v934_v56, %v734_v57 }
 0x43a   :  { %v1098_v59 = vpop.f32.mrf.mxu0 }
 0x43b   :  { %v741_v61 = vmul.f32 0.1, %v735_v58 }
 0x43c   :  { %v737_v60 = vpop.f32.mrf.mxu0 }
 0x43d   :  { %v738_v62 = vadd.f32 %v934_v56, %v737_v60  ;;  %v743_v2 = vmax.f32 %v735_v58, %v741_v61 }
 0x43e   :  { %v1099_v63 = vpop.f32.mrf.mxu0 }
 0x43f   :  { %v742_v0 = vmul.f32 0.1, %v738_v62 }
 0x441   :  { %v744_v3 = vmax.f32 %v738_v62, %v742_v0 }
 0x443   :  { %v764_v4 = vpack.c.bf16 %v744_v3, %v743_v2 }
 0x445   :  { %1117 = vmatmul.mubr.bf16.vlgmr.msra.gmra.mxu1 %v764_v4 }
 0x505   :  { %v853_v5 = vpop.f32.mrf.mxu1 }
 0x506   :  { %v854_v6 = vadd.f32 %v944_v1, %v853_v5 }
 0x507   :  { %v1118_v7 = vpop.f32.mrf.mxu1 }
 0x508   :  { %v860_v8 = vmul.f32 0.1, %v854_v6 }
 0x509   :  { %v856_v9 = vpop.f32.mrf.mxu1 }
 0x50a   :  { %v862_v10 = vmax.f32 %v854_v6, %v860_v8  ;;  %v857_v11 = vadd.f32 %v944_v1, %v856_v9 }
 0x50b   :  { %v1119_v12 = vpop.f32.mrf.mxu1 }
 0x50c   :  { %864 = vst [vmem:[#allocation7] sm:$0xff] %v862_v10  ;;  %v861_v13 = vmul.f32 0.1, %v857_v11 }
 0x50e   :  { %v863_v14 = vmax.f32 %v857_v11, %v861_v13 }
 0x510   :  { %865 = vst [vmem:[#allocation7 + $0x8] sm:$0xff] %v863_v14 }
 0x511   :  { %1241 = shalt.err (!%p1238_p0)
}
 0x512   :  { %s1264_s6 = smov 128   ;;  %s1265_s9 = smov 8  }
 0x513   :  { %877 = dma.vmem_to_hbm [thread:$0]  %s872_s30, 256, %s1405_s7, [#allocation4], %s1264_s6, %s1264_s6, %s1265_s9  }
 0x514   :  { %1254 = dma.done.wait [#allocation4], 256  }
 0x515   :  { %1255 = vsyncadd [#allocation4], 4294967040 }
 0x516   :  { %881 = vsyncpa [#allocation3], 1 }
 0x517   :  { %882 = vsyncpa [#allocation6], 1 }
 0x518   :  { %883 = vsyncpa [#allocation4], 1 }

// kernel: tpu_custom_call.1
= control target key start
LH: loop header
LB: loop body
LE: loop exit
PB: predicated region body
PF: predicated region fallthrough
CT: control target
= control target key end

     0   :  { %12 = vsyncpa [#allocation3], 0  ;;  %s1398_s0 = inlined_call_operand.vmem [shape: bf16[16,256], index: 0, kind: input, shape index: {}]   ;;  %s1399_s1 = inlined_call_operand.vmem [shape: f32[16,1], index: 1, kind: input, shape index: {}]   ;;  %s1400_s2 = inlined_call_operand.hbm [shape: bf16[256,128], index: 2, kind: input, shape index: {}]   ;;  %s1401_s3 = inlined_call_operand.vmem [shape: f32[1,128], index: 3, kind: input, shape index: {}]   ;;  %s1402_s4 = inlined_call_operand.vmem [shape: f32[1,128], index: 4, kind: input, shape index: {}]   ;;  %s1403_s5 = inlined_call_operand.hbm [shape: bf16[5,128,128], index: 5, kind: input, shape index: {}]   ;;  %s1404_s6 = inlined_call_operand.vmem [shape: f32[5,1,128], index: 6, kind: input, shape index: {}]   ;;  %s1405_s7 = inlined_call_operand.hbm [shape: f32[16,128], index: 7, kind: output, shape index: {}]  }
   0x1   :  { %13 = vsyncpa [#allocation6], 0 }
   0x2   :  { %14 = vsyncpa [#allocation4], 0  ;;  %s1256_s24 = smov [#allocation2]  }
   0x3   :  { %s24_s25 = sshll.u32 %s1256_s24, 4  ;;  %s25_s25 = int_to_ptr.vmem [resolvable:$true] %s24_s25 }
   0x4   :  { %s1198_s26 = scalar_lea.vmem %s25_s25, 2048  ;;  %p1203_p1 = scmp.lt.s32.totalorder %s25_s25, %s25_s25 }
   0x5   :  { %p1199_p0 = scmp.ne.s32.totalorder %s25_s25, %s1198_s26  ;;  %p1204_p2 = scmp.lt.s32.totalorder %s1198_s26, %s1198_s26 }
   0x7   :  { %p1205_p3 = por %p1204_p2, %p1203_p1 }
   0x9   :  { %p1206_p4 = pnand %p1205_p3, %p1199_p0 }
   0xb   :  { %1209 = shalt.err (!%p1206_p4)
}
   0xc   :  { %s1257_s27 = smov 64   ;;  %s1258_s28 = smov 4  }
   0xd   :  { %30 = dma.hbm_to_vmem [thread:$0]  %s1400_s2, 2048, %s25_s25, [#allocation3], %s1257_s27, %s1257_s27, %s1258_s28  }
   0xe   :  { %s1259_s8 = smov [#allocation5]  }
   0xf   :  { %s40_s9 = sshll.u32 %s1259_s8, 4  ;;  %s41_s9 = int_to_ptr.vmem [resolvable:$true] %s40_s9 }
  0x10   :  { %s1218_s10 = scalar_lea.vmem %s41_s9, 5120  ;;  %p1223_p6 = scmp.lt.s32.totalorder %s41_s9, %s41_s9 }
  0x11   :  { %p1219_p5 = scmp.ne.s32.totalorder %s41_s9, %s1218_s10  ;;  %p1224_p7 = scmp.lt.s32.totalorder %s1218_s10, %s1218_s10 }
  0x13   :  { %p1225_p8 = por %p1224_p7, %p1223_p6 }
  0x15   :  { %p1226_p9 = pnand %p1225_p8, %p1219_p5 }
  0x17   :  { %1229 = shalt.err (!%p1226_p9)
}
  0x18   :  { %46 = dma.hbm_to_vmem [thread:$0]  %s1403_s5, 5120, %s41_s9, [#allocation6], %s1257_s27, %s1257_s27, %s1258_s28  }
  0x19   :  { %1250 = dma.done.wait [#allocation3], 2048  }
  0x1a   :  { %1251 = vsyncadd [#allocation3], 4294965248 }
  0x1b   :  { %1252 = dma.done.wait [#allocation6], 5120  }
  0x1c   :  { %1253 = vsyncadd [#allocation6], 4294962176  ;;  %v1260_v0 = vmov 0   ;;  %v1261_v1 = vmov 0.0   ;;  %v1131_v2 = vld [vmem:[#allocation2 + $0x78] sm:$0xff]   ;;  %v1133_v4 = vld [vmem:[#allocation2 + $0x70] sm:$0xff]  }
  0x1d   :  { %1130 = vset.pattern.permute.xlu0 %v1260_v0  ;;  %1020 = vmatprep.subr.bf16.mxu1 %v1261_v1  ;;  %v1132_v3 = vld [vmem:[#allocation2 + $0x38] sm:$0xff]   ;;  %v1134_v5 = vld [vmem:[#allocation2 + $0x30] sm:$0xff]   ;;  %v1135_v6 = vld [vmem:[#allocation2 + $0x68] sm:$0xff]   ;;  %vm1262_vm0 = vmmov 0   ;;  %s1263_s29 = smov [#allocation7]  }
  0x1e   :  { %953 = vmatprep.subr.bf16.mxu0 %v1131_v2  ;;  %v1136_v7 = vld [vmem:[#allocation2 + $0x28] sm:$0xff]   ;;  %v1137_v8 = vld [vmem:[#allocation2 + $0x60] sm:$0xff]   ;;  %v1139_v10 = vld [vmem:[#allocation2 + $0x58] sm:$0xff]   ;;  %1036 = vmatprep.mubr.msk.bf16.mxu1 %vm1262_vm0, %v1261_v1  ;;  %s871_s30 = sshll.u32 %s1263_s29, 4  ;;  %s872_s30 = int_to_ptr.vmem [resolvable:$true] %s871_s30 }
  0x1f   :  { %954 = vmatpush3.bf16.msra.mxu0 %v1132_v3  ;;  %v1138_v9 = vld [vmem:[#allocation2 + $0x20] sm:$0xff]   ;;  %v1140_v11 = vld [vmem:[#allocation2 + $0x18] sm:$0xff]   ;;  %v1141_v12 = vld [vmem:[#allocation2 + $0x50] sm:$0xff]   ;;  %s1230_s8 = scalar_lea.vmem %s872_s30, 256  ;;  %p1235_p11 = scmp.lt.s32.totalorder %s872_s30, %s872_s30 }
  0x20   :  { %955 = vmatprep.subr.bf16.mxu0 %v1133_v4  ;;  %v1142_v13 = vld [vmem:[#allocation2 + $0x10] sm:$0xff]   ;;  %v1149_v14 = vld [vmem:[%s1398_s0 + $0x4] ss:$8 sps:$4 sm:$0xff]   ;;  %v1150_v17 = vld [vmem:[#allocation5 + $0x38] sm:$0xff]   ;;  %p1231_p10 = scmp.ne.s32.totalorder %s872_s30, %s1230_s8  ;;  %p1236_p12 = scmp.lt.s32.totalorder %s1230_s8, %s1230_s8 }
  0x21   :  { %v90_v15 = vld [vmem:[%s1399_s1] sm:$0xff]  ;;  %v1143_v16 = vld [vmem:[#allocation2 + $0x48] sm:$0xff]   ;;  %249 = vmatprep.mubr.bf16.mxu0 %v1149_v14  ;;  %1021 = vmatpush3.bf16.msra.mxu1 %v1150_v17  ;;  %v1151_v19 = vld [vmem:[#allocation5 + $0x30] sm:$0xff]  }
  0x22   :  { %95 = vperm.xlu0 %1130, %v90_v15   ;;  %v91_v18 = vld [vmem:[%s1399_s1 + $0x8] sm:$0xff]  ;;  %1022 = vmatprep.subr.bf16.mxu1 %v1261_v1  ;;  %v1145_v21 = vld [vmem:[#allocation2 + $0x40] sm:$0xff]   ;;  %v1154_v26 = vld [vmem:[#allocation5 + $0x18] sm:$0xff]   ;;  %p1237_p13 = por %p1236_p12, %p1235_p11 }
  0x23   :  { %956 = vmatpush3.bf16.msra.mxu0 %v1134_v5  ;;  %v1144_v20 = vld [vmem:[#allocation2 + $0x8] sm:$0xff]   ;;  %v1146_v23 = vld [vmem:[#allocation2] sm:$0xff]   ;;  %v1155_v27 = vld [vmem:[#allocation5 + $0x10] sm:$0xff]  }
  0x24   :  { %957 = vmatprep.subr.bf16.mxu0 %v1135_v6  ;;  %v1152_v22 = vld [vmem:[#allocation5 + $0x28] sm:$0xff]   ;;  %v1153_v25 = vld [vmem:[#allocation5 + $0x20] sm:$0xff]   ;;  %v1158_v30 = vld [vmem:[#allocation5 + $0x78] sm:$0xff]   ;;  %p1238_p0 = pnand %p1237_p13, %p1231_p10 }
  0x25   :  { %1023 = vmatpush3.bf16.msra.mxu1 %v1151_v19  ;;  %v1147_v24 = vld [vmem:[%s1398_s0] ss:$8 sps:$4 sm:$0xff]   ;;  %v1159_v31 = vld [vmem:[#allocation5 + $0x70] sm:$0xff]   ;;  %v1162_v34 = vld [vmem:[#allocation5 + $0x58] sm:$0xff]  }
  0x26   :  { %100 = vperm.xlu0 %1130, %v91_v18   ;;  %1024 = vmatprep.subr.bf16.mxu1 %v1261_v1  ;;  %v1156_v28 = vld [vmem:[#allocation5 + $0x8] sm:$0xff]   ;;  %v1157_v29 = vld [vmem:[#allocation5] sm:$0xff]   ;;  %v1163_v56 = vld [vmem:[#allocation5 + $0x50] sm:$0xff]  }
  0x27   :  { %958 = vmatpush3.bf16.msra.mxu0 %v1136_v7  ;;  %v1160_v32 = vld [vmem:[#allocation5 + $0x68] sm:$0xff]   ;;  %v1161_v33 = vld [vmem:[#allocation5 + $0x60] sm:$0xff]   ;;  %v1166_v59 = vld [vmem:[#allocation5 + $0xb8] sm:$0xff]  }
  0x28   :  { %959 = vmatprep.subr.bf16.mxu0 %v1137_v8  ;;  %v884_v35 = vld [vmem:[%s1401_s3] ss:$0 sm:$0xff]  ;;  %v1164_v57 = vld [vmem:[#allocation5 + $0x48] sm:$0xff]   ;;  %v1167_v60 = vld [vmem:[#allocation5 + $0xb0] sm:$0xff]  }
  0x29   :  { %1025 = vmatpush3.bf16.msra.mxu1 %v1152_v22  ;;  %v903_v42 = vld [vmem:[%s1402_s4] ss:$0 sm:$0xff]  ;;  %v1168_v61 = vld [vmem:[#allocation5 + $0xa8] sm:$0xff]   ;;  %v1170_v63 = vld [vmem:[#allocation5 + $0x98] sm:$0xff]  }
  0x2a   :  { %1026 = vmatprep.subr.bf16.mxu1 %v1261_v1  ;;  %v1165_v58 = vld [vmem:[#allocation5 + $0x40] sm:$0xff]   ;;  %v1172_v14 = vld [vmem:[#allocation5 + $0x88] sm:$0xff]   ;;  %v1175_v17 = vld [vmem:[#allocation5 + $0xf0] sm:$0xff]  }
  0x2b   :  { %960 = vmatpush3.bf16.msra.mxu0 %v1138_v9  ;;  %v1169_v62 = vld [vmem:[#allocation5 + $0xa0] sm:$0xff]   ;;  %v1176_v18 = vld [vmem:[#allocation5 + $0xe8] sm:$0xff]  }
  0x2c   :  { %961 = vmatprep.subr.bf16.mxu0 %v1139_v10  ;;  %v904_v0 = vld [vmem:[%s1404_s6] ss:$0 sm:$0xff] }
  0x2d   :  { %1027 = vmatpush3.bf16.msra.mxu1 %v1153_v25  ;;  %v1173_v15 = vld [vmem:[#allocation5 + $0x80] sm:$0xff]  }
  0x2e   :  { %1028 = vmatprep.subr.bf16.mxu1 %v1261_v1  ;;  %v1177_v19 = vld [vmem:[#allocation5 + $0xe0] sm:$0xff]  }
  0x2f   :  { %962 = vmatpush3.bf16.msra.mxu0 %v1140_v11 }
  0x30   :  { %963 = vmatprep.subr.bf16.mxu0 %v1141_v12 }
  0x31   :  { %1029 = vmatpush3.bf16.msra.mxu1 %v1154_v26 }
  0x32   :  { %1030 = vmatprep.subr.bf16.mxu1 %v1261_v1 }
  0x33   :  { %964 = vmatpush3.bf16.msra.mxu0 %v1142_v13  ;;  %v1171_v13 = vld [vmem:[#allocation5 + $0x90] sm:$0xff]  }
  0x34   :  { %965 = vmatprep.subr.bf16.mxu0 %v1143_v16  ;;  %v1174_v16 = vld [vmem:[#allocation5 + $0xf8] sm:$0xff]  }
  0x35   :  { %1031 = vmatpush3.bf16.msra.mxu1 %v1155_v27 }
  0x36   :  { %1032 = vmatprep.subr.bf16.mxu1 %v1261_v1 }
  0x37   :  { %966 = vmatpush3.bf16.msra.mxu0 %v1144_v20  ;;  %v1178_v20 = vld [vmem:[#allocation5 + $0xd8] sm:$0xff]  }
  0x38   :  { %967 = vmatprep.subr.bf16.mxu0 %v1145_v21  ;;  %v914_v21 = vld [vmem:[%s1404_s6 + $0x1] ss:$0 sm:$0xff] }
  0x39   :  { %1033 = vmatpush3.bf16.msra.mxu1 %v1156_v28 }
  0x3a   :  { %1034 = vmatprep.subr.bf16.mxu1 %v1261_v1 }
  0x3b   :  { %968 = vmatpush3.bf16.msra.mxu0 %v1146_v23 }
  0x3c   :  { %1040 = vmatprep.subr.bf16.mxu0 %v1261_v1 }
  0x3d   :  { %1035 = vmatpush3.bf16.msra.mxu1 %v1157_v29 }
  0x3e   :  { %250 = vmatmul.mubr.bf16.vlgmr.msra.gmra.mxu0 %v1147_v24  ;;  %1060 = vmatprep.subr.bf16.mxu1 %v1261_v1 }
  0x3f   :  { %1056 = vmatprep.mubr.msk.bf16.mxu0 %vm1262_vm0, %v1261_v1  ;;  %1041 = vmatpush3.bf16.msra.mxu0 %v1158_v30 }
  0x40   :  { %1042 = vmatprep.subr.bf16.mxu0 %v1261_v1 }
  0x43   :  { %1043 = vmatpush3.bf16.msra.mxu0 %v1159_v31 }
  0x44   :  { %1044 = vmatprep.subr.bf16.mxu0 %v1261_v1 }
  0x47   :  { %1045 = vmatpush3.bf16.msra.mxu0 %v1160_v32 }
  0x48   :  { %1046 = vmatprep.subr.bf16.mxu0 %v1261_v1 }
  0x4b   :  { %1047 = vmatpush3.bf16.msra.mxu0 %v1161_v33  ;;  %v1179_v33 = vld [vmem:[#allocation5 + $0xd0] sm:$0xff]  }
  0x4c   :  { %1048 = vmatprep.subr.bf16.mxu0 %v1261_v1 }
  0x4f   :  { %1049 = vmatpush3.bf16.msra.mxu0 %v1162_v34  ;;  %v1180_v34 = vld [vmem:[#allocation5 + $0xc8] sm:$0xff]  }
  0x50   :  { %1050 = vmatprep.subr.bf16.mxu0 %v1261_v1 }
  0x53   :  { %1051 = vmatpush3.bf16.msra.mxu0 %v1163_v56  ;;  %v934_v56 = vld [vmem:[%s1404_s6 + $0x3] ss:$0 sm:$0xff] }
  0x54   :  { %1052 = vmatprep.subr.bf16.mxu0 %v1261_v1 }
  0x57   :  { %1053 = vmatpush3.bf16.msra.mxu0 %v1164_v57 }
  0x58   :  { %1054 = vmatprep.subr.bf16.mxu0 %v1261_v1 }
  0x5b   :  { %1055 = vmatpush3.bf16.msra.mxu0 %v1165_v58 }
  0x5c   :  { %1080 = vmatprep.subr.bf16.mxu0 %v1261_v1 }
  0x9d   :  { %v96_v36 = vpop.permute.xlu0 %95 }
  0x9e   :  { %v109_v38 = vmul.f32 %v884_v35, %v96_v36  ;;  %v1182_v36 = vld [vmem:[#allocation5 + $0x138] sm:$0xff]  }
  0xa1   :  { %v101_v41 = vpop.permute.xlu0 %100 }
  0xa2   :  { %v110_v46 = vmul.f32 %v884_v35, %v101_v41  ;;  %v1181_v35 = vld [vmem:[#allocation5 + $0xc0] sm:$0xff]  }
  0xa3   :  { %v924_v41 = vld [vmem:[%s1404_s6 + $0x2] ss:$0 sm:$0xff] }
  0xfe   :  { %v969_v37 = vpop.f32.mrf.mxu0 }
 0x100   :  { %v970_v39 = vpop.f32.mrf.mxu0 }
 0x101   :  { %v971_v40 = vadd.f32 %v970_v39, %v969_v37  ;;  %v1183_v37 = vld [vmem:[#allocation5 + $0x130] sm:$0xff]   ;;  %v1185_v39 = vld [vmem:[#allocation5 + $0x120] sm:$0xff]  }
 0x102   :  { %v972_v43 = vpop.f32.mrf.mxu0 }
 0x103   :  { %v252_v44 = vadd.f32 %v971_v40, %v109_v38  ;;  %v1184_v38 = vld [vmem:[#allocation5 + $0x128] sm:$0xff]   ;;  %v1186_v40 = vld [vmem:[#allocation5 + $0x118] sm:$0xff]  }
 0x104   :  { %v973_v45 = vpop.f32.mrf.mxu0 }
 0x105   :  { %v265_v47 = vadd.f32 %v903_v42, %v252_v44  ;;  %v974_v48 = vadd.f32 %v973_v45, %v972_v43 }
 0x107   :  { %v255_v49 = vadd.f32 %v974_v48, %v110_v46  ;;  %v267_v50 = vmul.f32 0.1, %v265_v47 }
 0x109   :  { %v266_v51 = vadd.f32 %v903_v42, %v255_v49  ;;  %v269_v53 = vmax.f32 %v265_v47, %v267_v50 }
 0x10b   :  { %v268_v52 = vmul.f32 0.1, %v266_v51 }
 0x10d   :  { %v270_v54 = vmax.f32 %v266_v51, %v268_v52 }
 0x10f   :  { %v288_v55 = vpack.c.bf16 %v270_v54, %v269_v53  ;;  %v1187_v53 = vld [vmem:[#allocation5 + $0x110] sm:$0xff]   ;;  %v1188_v54 = vld [vmem:[#allocation5 + $0x108] sm:$0xff]  }
 0x111   :  { %1037 = vmatmul.mubr.bf16.vlgmr.msra.gmra.mxu1 %v288_v55  ;;  %v1189_v55 = vld [vmem:[#allocation5 + $0x100] sm:$0xff]  }
 0x112   :  { %1076 = vmatprep.mubr.msk.bf16.mxu1 %vm1262_vm0, %v1261_v1  ;;  %1061 = vmatpush3.bf16.msra.mxu1 %v1166_v59 }
 0x113   :  { %1062 = vmatprep.subr.bf16.mxu1 %v1261_v1 }
 0x116   :  { %1063 = vmatpush3.bf16.msra.mxu1 %v1167_v60 }
 0x117   :  { %1064 = vmatprep.subr.bf16.mxu1 %v1261_v1 }
 0x11a   :  { %1065 = vmatpush3.bf16.msra.mxu1 %v1168_v61 }
 0x11b   :  { %1066 = vmatprep.subr.bf16.mxu1 %v1261_v1 }
 0x11e   :  { %1067 = vmatpush3.bf16.msra.mxu1 %v1169_v62 }
 0x11f   :  { %1068 = vmatprep.subr.bf16.mxu1 %v1261_v1 }
 0x122   :  { %1069 = vmatpush3.bf16.msra.mxu1 %v1170_v63 }
 0x123   :  { %1070 = vmatprep.subr.bf16.mxu1 %v1261_v1 }
 0x126   :  { %1071 = vmatpush3.bf16.msra.mxu1 %v1171_v13 }
 0x127   :  { %1072 = vmatprep.subr.bf16.mxu1 %v1261_v1 }
 0x12a   :  { %1073 = vmatpush3.bf16.msra.mxu1 %v1172_v14 }
 0x12b   :  { %1074 = vmatprep.subr.bf16.mxu1 %v1261_v1 }
 0x12e   :  { %1075 = vmatpush3.bf16.msra.mxu1 %v1173_v15 }
 0x12f   :  { %1100 = vmatprep.subr.bf16.mxu1 %v1261_v1 }
 0x1d1   :  { %v377_v2 = vpop.f32.mrf.mxu1 }
 0x1d2   :  { %v378_v3 = vadd.f32 %v904_v0, %v377_v2 }
 0x1d3   :  { %v1038_v4 = vpop.f32.mrf.mxu1 }
 0x1d4   :  { %v384_v6 = vmul.f32 0.1, %v378_v3 }
 0x1d5   :  { %v380_v5 = vpop.f32.mrf.mxu1 }
 0x1d6   :  { %v381_v7 = vadd.f32 %v904_v0, %v380_v5  ;;  %v386_v10 = vmax.f32 %v378_v3, %v384_v6 }
 0x1d7   :  { %v1039_v8 = vpop.f32.mrf.mxu1 }
 0x1d8   :  { %v385_v9 = vmul.f32 0.1, %v381_v7 }
 0x1da   :  { %v387_v11 = vmax.f32 %v381_v7, %v385_v9 }
 0x1dc   :  { %v407_v12 = vpack.c.bf16 %v387_v11, %v386_v10 }
 0x1de   :  { %1057 = vmatmul.mubr.bf16.vlgmr.msra.gmra.mxu0 %v407_v12 }
 0x1df   :  { %1096 = vmatprep.mubr.msk.bf16.mxu0 %vm1262_vm0, %v1261_v1  ;;  %1081 = vmatpush3.bf16.msra.mxu0 %v1174_v16 }
 0x1e0   :  { %1082 = vmatprep.subr.bf16.mxu0 %v1261_v1 }
 0x1e3   :  { %1083 = vmatpush3.bf16.msra.mxu0 %v1175_v17 }
 0x1e4   :  { %1084 = vmatprep.subr.bf16.mxu0 %v1261_v1 }
 0x1e7   :  { %1085 = vmatpush3.bf16.msra.mxu0 %v1176_v18 }
 0x1e8   :  { %1086 = vmatprep.subr.bf16.mxu0 %v1261_v1 }
 0x1eb   :  { %1087 = vmatpush3.bf16.msra.mxu0 %v1177_v19 }
 0x1ec   :  { %1088 = vmatprep.subr.bf16.mxu0 %v1261_v1 }
 0x1ef   :  { %1089 = vmatpush3.bf16.msra.mxu0 %v1178_v20 }
 0x1f0   :  { %1090 = vmatprep.subr.bf16.mxu0 %v1261_v1 }
 0x1f3   :  { %1091 = vmatpush3.bf16.msra.mxu0 %v1179_v33 }
 0x1f4   :  { %1092 = vmatprep.subr.bf16.mxu0 %v1261_v1 }
 0x1f7   :  { %1093 = vmatpush3.bf16.msra.mxu0 %v1180_v34 }
 0x1f8   :  { %1094 = vmatprep.subr.bf16.mxu0 %v1261_v1 }
 0x1fb   :  { %1095 = vmatpush3.bf16.msra.mxu0 %v1181_v35 }
 0x29e   :  { %v496_v22 = vpop.f32.mrf.mxu0 }
 0x29f   :  { %v497_v23 = vadd.f32 %v914_v21, %v496_v22 }
 0x2a0   :  { %v1058_v24 = vpop.f32.mrf.mxu0 }
 0x2a1   :  { %v503_v26 = vmul.f32 0.1, %v497_v23 }
 0x2a2   :  { %v499_v25 = vpop.f32.mrf.mxu0 }
 0x2a3   :  { %v500_v27 = vadd.f32 %v914_v21, %v499_v25  ;;  %v505_v30 = vmax.f32 %v497_v23, %v503_v26 }
 0x2a4   :  { %v1059_v28 = vpop.f32.mrf.mxu0 }
 0x2a5   :  { %v504_v29 = vmul.f32 0.1, %v500_v27 }
 0x2a7   :  { %v506_v31 = vmax.f32 %v500_v27, %v504_v29 }
 0x2a9   :  { %v526_v32 = vpack.c.bf16 %v506_v31, %v505_v30 }
 0x2ab   :  { %1077 = vmatmul.mubr.bf16.vlgmr.msra.gmra.mxu1 %v526_v32 }
 0x2ac   :  { %1116 = vmatprep.mubr.msk.bf16.mxu1 %vm1262_vm0, %v1261_v1  ;;  %1101 = vmatpush3.bf16.msra.mxu1 %v1182_v36 }
 0x2ad   :  { %1102 = vmatprep.subr.bf16.mxu1 %v1261_v1 }
 0x2b0   :  { %1103 = vmatpush3.bf16.msra.mxu1 %v1183_v37 }
 0x2b1   :  { %1104 = vmatprep.subr.bf16.mxu1 %v1261_v1 }
 0x2b4   :  { %1105 = vmatpush3.bf16.msra.mxu1 %v1184_v38 }
 0x2b5   :  { %1106 = vmatprep.subr.bf16.mxu1 %v1261_v1 }
 0x2b8   :  { %1107 = vmatpush3.bf16.msra.mxu1 %v1185_v39 }
 0x2b9   :  { %1108 = vmatprep.subr.bf16.mxu1 %v1261_v1 }
 0x2bc   :  { %1109 = vmatpush3.bf16.msra.mxu1 %v1186_v40 }
 0x2bd   :  { %1110 = vmatprep.subr.bf16.mxu1 %v1261_v1 }
 0x2c0   :  { %1111 = vmatpush3.bf16.msra.mxu1 %v1187_v53 }
 0x2c1   :  { %1112 = vmatprep.subr.bf16.mxu1 %v1261_v1 }
 0x2c4   :  { %1113 = vmatpush3.bf16.msra.mxu1 %v1188_v54 }
 0x2c5   :  { %1114 = vmatprep.subr.bf16.mxu1 %v1261_v1  ;;  %v944_v1 = vld [vmem:[%s1404_s6 + $0x4] ss:$0 sm:$0xff] }
 0x2c8   :  { %1115 = vmatpush3.bf16.msra.mxu1 %v1189_v55 }
 0x36b   :  { %v615_v42 = vpop.f32.mrf.mxu1 }
 0x36c   :  { %v616_v43 = vadd.f32 %v924_v41, %v615_v42 }
 0x36d   :  { %v1078_v44 = vpop.f32.mrf.mxu1 }
 0x36e   :  { %v622_v46 = vmul.f32 0.1, %v616_v43 }
 0x36f   :  { %v618_v45 = vpop.f32.mrf.mxu1 }
 0x370   :  { %v619_v47 = vadd.f32 %v924_v41, %v618_v45  ;;  %v624_v50 = vmax.f32 %v616_v43, %v622_v46 }
 0x371   :  { %v1079_v48 = vpop.f32.mrf.mxu1 }
 0x372   :  { %v623_v49 = vmul.f32 0.1, %v619_v47 }
 0x374   :  { %v625_v51 = vmax.f32 %v619_v47, %v623_v49 }
 0x376   :  { %v645_v52 = vpack.c.bf16 %v625_v51, %v624_v50 }
 0x378   :  { %1097 = vmatmul.mubr.bf16.vlgmr.msra.gmra.mxu0 %v645_v52 }
 0x438   :  { %v734_v57 = vpop.f32.mrf.mxu0 }
 0x439   :  { %v735_v58 = vadd.f32 %v934_v56, %v734_v57 }
 0x43a   :  { %v1098_v59 = vpop.f32.mrf.mxu0 }
 0x43b   :  { %v741_v61 = vmul.f32 0.1, %v735_v58 }
 0x43c   :  { %v737_v60 = vpop.f32.mrf.mxu0 }
 0x43d   :  { %v738_v62 = vadd.f32 %v934_v56, %v737_v60  ;;  %v743_v2 = vmax.f32 %v735_v58, %v741_v61 }
 0x43e   :  { %v1099_v63 = vpop.f32.mrf.mxu0 }
 0x43f   :  { %v742_v0 = vmul.f32 0.1, %v738_v62 }
 0x441   :  { %v744_v3 = vmax.f32 %v738_v62, %v742_v0 }
 0x443   :  { %v764_v4 = vpack.c.bf16 %v744_v3, %v743_v2 }
 0x445   :  { %1117 = vmatmul.mubr.bf16.vlgmr.msra.gmra.mxu1 %v764_v4 }
 0x505   :  { %v853_v5 = vpop.f32.mrf.mxu1 }
 0x506   :  { %v854_v6 = vadd.f32 %v944_v1, %v853_v5 }
 0x507   :  { %v1118_v7 = vpop.f32.mrf.mxu1 }
 0x508   :  { %v860_v8 = vmul.f32 0.1, %v854_v6 }
 0x509   :  { %v856_v9 = vpop.f32.mrf.mxu1 }
 0x50a   :  { %v862_v10 = vmax.f32 %v854_v6, %v860_v8  ;;  %v857_v11 = vadd.f32 %v944_v1, %v856_v9 }
 0x50b   :  { %v1119_v12 = vpop.f32.mrf.mxu1 }
 0x50c   :  { %864 = vst [vmem:[#allocation7] sm:$0xff] %v862_v10  ;;  %v861_v13 = vmul.f32 0.1, %v857_v11 }
 0x50e   :  { %v863_v14 = vmax.f32 %v857_v11, %v861_v13 }
 0x510   :  { %865 = vst [vmem:[#allocation7 + $0x8] sm:$0xff] %v863_v14 }
 0x511   :  { %1241 = shalt.err (!%p1238_p0)
}
 0x512   :  { %s1264_s6 = smov 128   ;;  %s1265_s9 = smov 8  }
 0x513   :  { %877 = dma.vmem_to_hbm [thread:$0]  %s872_s30, 256, %s1405_s7, [#allocation4], %s1264_s6, %s1264_s6, %s1265_s9  }
 0x514   :  { %1254 = dma.done.wait [#allocation4], 256  }
 0x515   :  { %1255 = vsyncadd [#allocation4], 4294967040 }
 0x516   :  { %881 = vsyncpa [#allocation3], 1 }
 0x517   :  { %882 = vsyncpa [#allocation6], 1 }
 0x518   :  { %883 = vsyncpa [#allocation4], 1 }

</bundles_post_ra>
